<compile_context>
chip_gen: v6e
topology: v6e:2x2x1
jax: 0.10.0
libtpu: 0.0.40
codegen_flags: <defaults>
</compile_context>

<pallas_src>
import functools

import jax
import jax.numpy as jnp
from jax.experimental import pallas as pl
from jax.experimental.pallas import tpu as pltpu


_NEG_BIG = -1e30  # bias for padded dictionary slots: never wins top-k, no NaNs


def _sae_kernel(x_ref, enc_w_ref, enc_b_ref, dec_w_ref, dec_b_ref,
                out_ref, feat_ref, *, k, compute_dtype):
    """One grid step == (SAE r, batch tile b).

    x_ref:     (TB, C)   activations for this SAE / batch tile
    enc_w_ref: (Dp, C)   encoder weight  (nn.Linear(C, D).weight layout, D padded)
    enc_b_ref: (1, Dp)   encoder bias    (padded slots = -1e30)
    dec_w_ref: (C, Dp)   decoder weight  (nn.Linear(D, C).weight layout, D padded)
    dec_b_ref: (1, C)    decoder bias
    out_ref:   (TB, C)   reconstruction
    feat_ref:  (1, Dp)   per-feature activation count, accumulated over batch tiles
    """
    b = pl.program_id(1)

    x = x_ref[...]
    dec_b = dec_b_ref[...]
    xc = x - dec_b                                          # (TB, C)

    enc_w = enc_w_ref[...]                                  # (Dp, C)
    if compute_dtype != jnp.float32:
        xc_mm, enc_w = xc.astype(compute_dtype), enc_w.astype(compute_dtype)
    else:
        xc_mm = xc
    pre = jax.lax.dot_general(
        xc_mm, enc_w,
        dimension_numbers=(((1,), (1,)), ((), ())),
        preferred_element_type=jnp.float32)                 # (TB, Dp)
    pre = pre + enc_b_ref[...]

    # ---- top-k mask: threshold-then-mask ----------------------------------
    # Strip the k-1 largest values; the max of what remains is the per-row
    # k-th largest.  One compare then builds the mask.  (Exact-k under exact
    # value ties is not guaranteed -- accepted trade-off; random floats never
    # tie.)
    work = pre
    for _ in range(k - 1):
        row_max = jnp.max(work, axis=-1, keepdims=True)
        work = jnp.where(work >= row_max, -jnp.inf, work)
    thr = jnp.max(work, axis=-1, keepdims=True)             # (TB, 1)
    sel = pre >= thr                                        # (TB, Dp)

    # x = act(x * mask) with act == ReLU; mask in {0,1} => where-form (no NaNs
    # even for the -1e30 padded slots).
    h = jnp.where(sel, jnp.maximum(pre, 0.0), 0.0)

    # feature_act = (mask > 0).sum(dim=0), accumulated across batch tiles.
    counts = jnp.sum(sel.astype(jnp.float32), axis=0, keepdims=True)   # (1, Dp)

    @pl.when(b == 0)
    def _init():
        feat_ref[...] = jnp.zeros_like(feat_ref)
    feat_ref[...] += counts

    dec_w = dec_w_ref[...]                                  # (C, Dp)
    if compute_dtype != jnp.float32:
        h_mm, dec_w = h.astype(compute_dtype), dec_w.astype(compute_dtype)
    else:
        h_mm = h
    rec = jax.lax.dot_general(
        h_mm, dec_w,
        dimension_numbers=(((1,), (1,)), ((), ())),
        preferred_element_type=jnp.float32)                 # (TB, C)
    out_ref[...] = (rec + dec_b).astype(out_ref.dtype)


def _round_up(n, m):
    return (n + m - 1) // m * m


def _pick_block_b(batch, requested=None, target=256):
    """Largest batch tile <= requested/target that divides B exactly and is
    sublane-friendly (multiple of 8) unless it spans the whole batch."""
    cand = requested if requested is not None else min(batch, target)
    cand = max(1, min(cand, batch))
    best = batch
    for tb in range(cand, 0, -1):
        if batch % tb == 0 and (tb % 8 == 0 or tb == batch):
            best = tb
            break
    return best


def dense_topk_sae_forward(x, enc_w, enc_b, dec_w, dec_b, num_active_features,
                           *, block_b=None, compute_dtype=jnp.float32):
    """x: [B, R, C] float32.

    Returns (recon, feature_act):
      recon       == PyTorch forward output (trailing squeeze(-1) applied)
      feature_act == (mask > 0).sum over batch, shape [R, D]
    """
    B, R, C = x.shape
    D = enc_w.shape[1]
    assert enc_w.shape == (R, D, C)
    assert dec_w.shape == (R, C, D)
    assert 1 <= num_active_features <= D

    # Pad the dictionary dim to a lane-dense multiple of 128.
    Dp = _round_up(D, 128)
    if Dp != D:
        pad = Dp - D
        enc_w = jnp.pad(enc_w, ((0, 0), (0, pad), (0, 0)))
        enc_b = jnp.pad(enc_b, ((0, 0), (0, pad)), constant_values=_NEG_BIG)
        dec_w = jnp.pad(dec_w, ((0, 0), (0, 0), (0, pad)))

    tb = _pick_block_b(B, block_b)
    nb = B // tb

    # TODO(synk): these transposes disappear if the caller keeps [R, B, C].
    x_r = jnp.transpose(x, (1, 0, 2))                  # [R, B, C]
    enc_b_r = enc_b.reshape(R, 1, Dp)
    dec_b_r = dec_b.reshape(R, 1, C)

    # Explicit scoped-VMEM budget: double-buffered blocks + headroom.
    block_bytes = 4 * (2 * Dp * C + Dp + C + 2 * tb * C + Dp)
    vmem_limit = int(min(64 << 20, max(2 * block_bytes + (8 << 20), 16 << 20)))

    kernel = functools.partial(_sae_kernel, k=num_active_features,
                               compute_dtype=compute_dtype)

    recon_r, feat_r = pl.pallas_call(
        kernel,
        grid=(R, nb),
        in_specs=[
            pl.BlockSpec((None, tb, C), lambda r, b: (r, b, 0)),   # x tile
            pl.BlockSpec((None, Dp, C), lambda r, b: (r, 0, 0)),   # encoder_w (resident over b)
            pl.BlockSpec((None, 1, Dp), lambda r, b: (r, 0, 0)),   # encoder_b
            pl.BlockSpec((None, C, Dp), lambda r, b: (r, 0, 0)),   # decoder_w (resident over b)
            pl.BlockSpec((None, 1, C),  lambda r, b: (r, 0, 0)),   # decoder_b
        ],
        out_specs=[
            pl.BlockSpec((None, tb, C), lambda r, b: (r, b, 0)),   # recon tile
            pl.BlockSpec((None, 1, Dp), lambda r, b: (r, 0, 0)),   # feature counts (acc over b)
        ],
        out_shape=(
            jax.ShapeDtypeStruct((R, B, C), jnp.float32),
            jax.ShapeDtypeStruct((R, 1, Dp), jnp.float32),
        ),
        compiler_params=pltpu.CompilerParams(
            dimension_semantics=("parallel", "arbitrary"),
            vmem_limit_bytes=vmem_limit),
    )(x_r, enc_w, enc_b_r, dec_w, dec_b_r)

    recon = jnp.transpose(recon_r, (1, 0, 2))          # [B, R, C]
    if C == 1:
        recon = jnp.squeeze(recon, axis=-1)            # matches torch .squeeze(-1)
    feature_act = feat_r[:, 0, :D]                     # crop padded features
    return recon, feature_act


def _reference_forward(x, enc_w, enc_b, dec_w, dec_b, k):
    """Plain-JAX replica of the PyTorch forward for verification."""
    hi = jax.lax.Precision.HIGHEST
    xc = x - dec_b[None, :, :]
    pre = jnp.einsum('brc,rdc->brd', xc, enc_w, precision=hi) + enc_b[None, :, :]
    _, idx = jax.lax.top_k(pre, k)
    mask = jnp.zeros_like(pre)
    mask = jax.vmap(jax.vmap(lambda m, i: m.at[i].set(1.0)))(mask, idx)
    h = jnp.maximum(pre * mask, 0.0)
    rec = jnp.einsum('brd,rcd->brc', h, dec_w, precision=hi) + dec_b[None, :, :]
    feat = jnp.sum((mask > 0).astype(jnp.float32), axis=0)
    return rec, feat


if __name__ == "__main__":
    # batch, num SAEs, channels, dict size (D deliberately not a multiple of
    # 128 to exercise the padding path), top-k
    B, R, C, D = 128, 4, 128, 448
    K = 8
    DECAY = 0.99

    key = jax.random.PRNGKey(0)
    kx, kew, keb, kdw, kdb = jax.random.split(key, 5)
    x = jax.random.normal(kx, (B, R, C), dtype=jnp.float32)
    encoder_w = jax.random.normal(kew, (R, D, C), dtype=jnp.float32) * 0.1
    encoder_b = jax.random.normal(keb, (R, D), dtype=jnp.float32) * 0.01
    decoder_w = jax.random.normal(kdw, (R, C, D), dtype=jnp.float32) * 0.1
    decoder_b = jax.random.normal(kdb, (R, C), dtype=jnp.float32) * 0.01
    act_sum = jnp.zeros((R, D), dtype=jnp.float32)
    act_ema = jnp.zeros((R, D), dtype=jnp.float32)

    recon, feature_act = dense_topk_sae_forward(
        x, encoder_w, encoder_b, decoder_w, decoder_b, K, block_b=64)
    recon = jax.block_until_ready(recon)
    feature_act = jax.block_until_ready(feature_act)

    # Buffer updates (in-place side effects in the PyTorch forward) as glue:
    act_sum = act_sum + feature_act
    act_ema = DECAY * act_ema + (1.0 - DECAY) * feature_act  # training-mode EMA

    # Verify against a plain-JAX reference of the same forward.
    ref_recon, ref_feat = _reference_forward(
        x, encoder_w, encoder_b, decoder_w, decoder_b, K)
    assert recon.shape == (B, R, C)
    assert feature_act.shape == (R, D)
    assert jnp.allclose(recon, ref_recon, atol=2e-4, rtol=2e-4), (
        float(jnp.max(jnp.abs(recon - ref_recon))))
    assert jnp.allclose(feature_act, ref_feat)

    print("KERNEL_OK")
</pallas_src>

<mosaic_0001>
module attributes {stable_mosaic.version = 11 : i64} {
  func.func @_sae_kernel(%arg0: i32, %arg1: i32, %arg2: memref<1x64x128xf32, #tpu.memory_space<vmem>>, %arg3: memref<1x512x128xf32, #tpu.memory_space<vmem>>, %arg4: memref<1x1x512xf32, #tpu.memory_space<vmem>>, %arg5: memref<1x128x512xf32, #tpu.memory_space<vmem>>, %arg6: memref<1x1x128xf32, #tpu.memory_space<vmem>>, %arg7: memref<1x64x128xf32, #tpu.memory_space<vmem>>, %arg8: memref<1x1x512xf32, #tpu.memory_space<vmem>>) attributes {dimension_semantics = [#tpu.dimension_semantics<parallel>, #tpu.dimension_semantics<arbitrary>], iteration_bounds = array<i64: 4, 2>, scalar_prefetch = 0 : i64, scratch_operands = 0 : i64, tpu.core_type = #tpu.core_type<tc>, window_params = [{transform_indices = @transform_0, window_bounds = array<i64: 1, 64, 128>}, {transform_indices = @transform_1, window_bounds = array<i64: 1, 512, 128>}, {transform_indices = @transform_2, window_bounds = array<i64: 1, 1, 512>}, {transform_indices = @transform_3, window_bounds = array<i64: 1, 128, 512>}, {transform_indices = @transform_4, window_bounds = array<i64: 1, 1, 128>}, {transform_indices = @transform_5, window_bounds = array<i64: 1, 64, 128>}, {transform_indices = @transform_6, window_bounds = array<i64: 1, 1, 512>}]} {
    %c0 = arith.constant 0 : index
    %c0_0 = arith.constant 0 : index
    %c0_1 = arith.constant 0 : index
    %0 = vector.load %arg2[%c0, %c0_0, %c0_1] : memref<1x64x128xf32, #tpu.memory_space<vmem>>, vector<1x64x128xf32>
    %1 = vector.shape_cast %0 : vector<1x64x128xf32> to vector<64x128xf32>
    %c0_2 = arith.constant 0 : index
    %c0_3 = arith.constant 0 : index
    %c0_4 = arith.constant 0 : index
    %2 = vector.load %arg6[%c0_2, %c0_3, %c0_4] : memref<1x1x128xf32, #tpu.memory_space<vmem>>, vector<1x1x128xf32>
    %3 = vector.shape_cast %2 : vector<1x1x128xf32> to vector<1x128xf32>
    %4 = vector.broadcast %3 : vector<1x128xf32> to vector<64x128xf32>
    %5 = arith.subf %1, %4 : vector<64x128xf32>
    %c0_5 = arith.constant 0 : index
    %c0_6 = arith.constant 0 : index
    %c0_7 = arith.constant 0 : index
    %6 = vector.load %arg3[%c0_5, %c0_6, %c0_7] : memref<1x512x128xf32, #tpu.memory_space<vmem>>, vector<1x512x128xf32>
    %7 = vector.shape_cast %6 : vector<1x512x128xf32> to vector<512x128xf32>
    %cst = arith.constant dense<0.000000e+00> : vector<64x512xf32>
    %8 = tpu.matmul %5, %7, %cst {dimension_numbers = #tpu.dot_dimension_numbers<[1], [1], [0], [0], [0, 0, 1, 0], [], []>} : vector<64x128xf32>, vector<512x128xf32>, vector<64x512xf32> -> vector<64x512xf32>
    %c0_8 = arith.constant 0 : index
    %c0_9 = arith.constant 0 : index
    %c0_10 = arith.constant 0 : index
    %9 = vector.load %arg4[%c0_8, %c0_9, %c0_10] : memref<1x1x512xf32, #tpu.memory_space<vmem>>, vector<1x1x512xf32>
    %10 = vector.shape_cast %9 : vector<1x1x512xf32> to vector<1x512xf32>
    %11 = vector.broadcast %10 : vector<1x512xf32> to vector<64x512xf32>
    %12 = arith.addf %8, %11 : vector<64x512xf32>
    %cst_11 = arith.constant dense<0xFF800000> : vector<64xf32>
    %13 = vector.multi_reduction <maximumf>, %12, %cst_11 [1] : vector<64x512xf32> to vector<64xf32>
    %14 = vector.shape_cast %13 : vector<64xf32> to vector<64x1xf32>
    %15 = vector.broadcast %14 : vector<64x1xf32> to vector<64x512xf32>
    %16 = arith.cmpf oge, %12, %15 : vector<64x512xf32>
    %cst_12 = arith.constant 0xFF800000 : f32
    %17 = vector.broadcast %cst_12 : f32 to vector<64x512xf32>
    %18 = arith.select %16, %17, %12 : vector<64x512xi1>, vector<64x512xf32>
    %cst_13 = arith.constant dense<0xFF800000> : vector<64xf32>
    %19 = vector.multi_reduction <maximumf>, %18, %cst_13 [1] : vector<64x512xf32> to vector<64xf32>
    %20 = vector.shape_cast %19 : vector<64xf32> to vector<64x1xf32>
    %21 = vector.broadcast %20 : vector<64x1xf32> to vector<64x512xf32>
    %22 = arith.cmpf oge, %18, %21 : vector<64x512xf32>
    %cst_14 = arith.constant 0xFF800000 : f32
    %23 = vector.broadcast %cst_14 : f32 to vector<64x512xf32>
    %24 = arith.select %22, %23, %18 : vector<64x512xi1>, vector<64x512xf32>
    %cst_15 = arith.constant dense<0xFF800000> : vector<64xf32>
    %25 = vector.multi_reduction <maximumf>, %24, %cst_15 [1] : vector<64x512xf32> to vector<64xf32>
    %26 = vector.shape_cast %25 : vector<64xf32> to vector<64x1xf32>
    %27 = vector.broadcast %26 : vector<64x1xf32> to vector<64x512xf32>
    %28 = arith.cmpf oge, %24, %27 : vector<64x512xf32>
    %cst_16 = arith.constant 0xFF800000 : f32
    %29 = vector.broadcast %cst_16 : f32 to vector<64x512xf32>
    %30 = arith.select %28, %29, %24 : vector<64x512xi1>, vector<64x512xf32>
    %cst_17 = arith.constant dense<0xFF800000> : vector<64xf32>
    %31 = vector.multi_reduction <maximumf>, %30, %cst_17 [1] : vector<64x512xf32> to vector<64xf32>
    %32 = vector.shape_cast %31 : vector<64xf32> to vector<64x1xf32>
    %33 = vector.broadcast %32 : vector<64x1xf32> to vector<64x512xf32>
    %34 = arith.cmpf oge, %30, %33 : vector<64x512xf32>
    %cst_18 = arith.constant 0xFF800000 : f32
    %35 = vector.broadcast %cst_18 : f32 to vector<64x512xf32>
    %36 = arith.select %34, %35, %30 : vector<64x512xi1>, vector<64x512xf32>
    %cst_19 = arith.constant dense<0xFF800000> : vector<64xf32>
    %37 = vector.multi_reduction <maximumf>, %36, %cst_19 [1] : vector<64x512xf32> to vector<64xf32>
    %38 = vector.shape_cast %37 : vector<64xf32> to vector<64x1xf32>
    %39 = vector.broadcast %38 : vector<64x1xf32> to vector<64x512xf32>
    %40 = arith.cmpf oge, %36, %39 : vector<64x512xf32>
    %cst_20 = arith.constant 0xFF800000 : f32
    %41 = vector.broadcast %cst_20 : f32 to vector<64x512xf32>
    %42 = arith.select %40, %41, %36 : vector<64x512xi1>, vector<64x512xf32>
    %cst_21 = arith.constant dense<0xFF800000> : vector<64xf32>
    %43 = vector.multi_reduction <maximumf>, %42, %cst_21 [1] : vector<64x512xf32> to vector<64xf32>
    %44 = vector.shape_cast %43 : vector<64xf32> to vector<64x1xf32>
    %45 = vector.broadcast %44 : vector<64x1xf32> to vector<64x512xf32>
    %46 = arith.cmpf oge, %42, %45 : vector<64x512xf32>
    %cst_22 = arith.constant 0xFF800000 : f32
    %47 = vector.broadcast %cst_22 : f32 to vector<64x512xf32>
    %48 = arith.select %46, %47, %42 : vector<64x512xi1>, vector<64x512xf32>
    %cst_23 = arith.constant dense<0xFF800000> : vector<64xf32>
    %49 = vector.multi_reduction <maximumf>, %48, %cst_23 [1] : vector<64x512xf32> to vector<64xf32>
    %50 = vector.shape_cast %49 : vector<64xf32> to vector<64x1xf32>
    %51 = vector.broadcast %50 : vector<64x1xf32> to vector<64x512xf32>
    %52 = arith.cmpf oge, %48, %51 : vector<64x512xf32>
    %cst_24 = arith.constant 0xFF800000 : f32
    %53 = vector.broadcast %cst_24 : f32 to vector<64x512xf32>
    %54 = arith.select %52, %53, %48 : vector<64x512xi1>, vector<64x512xf32>
    %cst_25 = arith.constant dense<0xFF800000> : vector<64xf32>
    %55 = vector.multi_reduction <maximumf>, %54, %cst_25 [1] : vector<64x512xf32> to vector<64xf32>
    %56 = vector.shape_cast %55 : vector<64xf32> to vector<64x1xf32>
    %57 = vector.broadcast %56 : vector<64x1xf32> to vector<64x512xf32>
    %58 = arith.cmpf oge, %12, %57 : vector<64x512xf32>
    %cst_26 = arith.constant 0.000000e+00 : f32
    %59 = vector.broadcast %cst_26 : f32 to vector<64x512xf32>
    %60 = arith.maximumf %12, %59 : vector<64x512xf32>
    %cst_27 = arith.constant 0.000000e+00 : f32
    %61 = vector.broadcast %cst_27 : f32 to vector<64x512xf32>
    %62 = arith.select %58, %60, %61 : vector<64x512xi1>, vector<64x512xf32>
    %63 = arith.extui %58 : vector<64x512xi1> to vector<64x512xi32>
    %64 = arith.sitofp %63 : vector<64x512xi32> to vector<64x512xf32>
    %cst_28 = arith.constant dense<0.000000e+00> : vector<512xf32>
    %65 = vector.multi_reduction <add>, %64, %cst_28 [0] : vector<64x512xf32> to vector<512xf32>
    %66 = vector.shape_cast %65 : vector<512xf32> to vector<1x512xf32>
    %c0_i32 = arith.constant 0 : i32
    %67 = arith.cmpi eq, %arg1, %c0_i32 : i32
    %68 = arith.extui %67 : i1 to i32
    %c0_i32_29 = arith.constant 0 : i32
    %69 = arith.cmpi ne, %68, %c0_i32_29 : i32
    scf.if %69 {
      %cst_43 = arith.constant 0.000000e+00 : f32
      %84 = vector.broadcast %cst_43 : f32 to vector<1x512xf32>
      %c0_44 = arith.constant 0 : index
      %c0_45 = arith.constant 0 : index
      %c0_46 = arith.constant 0 : index
      %85 = vector.load %arg8[%c0_44, %c0_45, %c0_46] : memref<1x1x512xf32, #tpu.memory_space<vmem>>, vector<1x1x512xf32>
      %86 = vector.shape_cast %85 : vector<1x1x512xf32> to vector<1x512xf32>
      %87 = vector.shape_cast %84 : vector<1x512xf32> to vector<1x1x512xf32>
      tpu.vector_store %arg8[%c0_44, %c0_45, %c0_46], %87 {strides = array<i32>} : memref<1x1x512xf32, #tpu.memory_space<vmem>>, vector<1x1x512xf32>,
    } else {
    }
    %c0_30 = arith.constant 0 : index
    %c0_31 = arith.constant 0 : index
    %c0_32 = arith.constant 0 : index
    %70 = vector.load %arg8[%c0_30, %c0_31, %c0_32] : memref<1x1x512xf32, #tpu.memory_space<vmem>>, vector<1x1x512xf32>
    %71 = vector.shape_cast %70 : vector<1x1x512xf32> to vector<1x512xf32>
    %72 = arith.addf %71, %66 : vector<1x512xf32>
    %c0_33 = arith.constant 0 : index
    %c0_34 = arith.constant 0 : index
    %c0_35 = arith.constant 0 : index
    %73 = vector.load %arg8[%c0_33, %c0_34, %c0_35] : memref<1x1x512xf32, #tpu.memory_space<vmem>>, vector<1x1x512xf32>
    %74 = vector.shape_cast %73 : vector<1x1x512xf32> to vector<1x512xf32>
    %75 = vector.shape_cast %72 : vector<1x512xf32> to vector<1x1x512xf32>
    tpu.vector_store %arg8[%c0_33, %c0_34, %c0_35], %75 {strides = array<i32>} : memref<1x1x512xf32, #tpu.memory_space<vmem>>, vector<1x1x512xf32>,
    %c0_36 = arith.constant 0 : index
    %c0_37 = arith.constant 0 : index
    %c0_38 = arith.constant 0 : index
    %76 = vector.load %arg5[%c0_36, %c0_37, %c0_38] : memref<1x128x512xf32, #tpu.memory_space<vmem>>, vector<1x128x512xf32>
    %77 = vector.shape_cast %76 : vector<1x128x512xf32> to vector<128x512xf32>
    %cst_39 = arith.constant dense<0.000000e+00> : vector<64x128xf32>
    %78 = tpu.matmul %62, %77, %cst_39 {dimension_numbers = #tpu.dot_dimension_numbers<[1], [1], [0], [0], [0, 0, 1, 0], [], []>} : vector<64x512xf32>, vector<128x512xf32>, vector<64x128xf32> -> vector<64x128xf32>
    %79 = vector.broadcast %3 : vector<1x128xf32> to vector<64x128xf32>
    %80 = arith.addf %78, %79 : vector<64x128xf32>
    %c0_40 = arith.constant 0 : index
    %c0_41 = arith.constant 0 : index
    %c0_42 = arith.constant 0 : index
    %81 = vector.load %arg7[%c0_40, %c0_41, %c0_42] : memref<1x64x128xf32, #tpu.memory_space<vmem>>, vector<1x64x128xf32>
    %82 = vector.shape_cast %81 : vector<1x64x128xf32> to vector<64x128xf32>
    %83 = vector.shape_cast %80 : vector<64x128xf32> to vector<1x64x128xf32>
    tpu.vector_store %arg7[%c0_40, %c0_41, %c0_42], %83 {strides = array<i32>} : memref<1x64x128xf32, #tpu.memory_space<vmem>>, vector<1x64x128xf32>,
    return
  }
  func.func @transform_0(%arg0: i32, %arg1: i32) -> (i32, i32, i32) {
    %c0_i32 = arith.constant 0 : i32
    %c0_i32_0 = arith.constant 0 : i32
    return %arg0, %arg1, %c0_i32 : i32, i32, i32
  }
  func.func @transform_1(%arg0: i32, %arg1: i32) -> (i32, i32, i32) {
    %c0_i32 = arith.constant 0 : i32
    %c0_i32_0 = arith.constant 0 : i32
    %c0_i32_1 = arith.constant 0 : i32
    return %arg0, %c0_i32, %c0_i32_0 : i32, i32, i32
  }
  func.func @transform_2(%arg0: i32, %arg1: i32) -> (i32, i32, i32) {
    %c0_i32 = arith.constant 0 : i32
    %c0_i32_0 = arith.constant 0 : i32
    %c0_i32_1 = arith.constant 0 : i32
    return %arg0, %c0_i32, %c0_i32_0 : i32, i32, i32
  }
  func.func @transform_3(%arg0: i32, %arg1: i32) -> (i32, i32, i32) {
    %c0_i32 = arith.constant 0 : i32
    %c0_i32_0 = arith.constant 0 : i32
    %c0_i32_1 = arith.constant 0 : i32
    return %arg0, %c0_i32, %c0_i32_0 : i32, i32, i32
  }
  func.func @transform_4(%arg0: i32, %arg1: i32) -> (i32, i32, i32) {
    %c0_i32 = arith.constant 0 : i32
    %c0_i32_0 = arith.constant 0 : i32
    %c0_i32_1 = arith.constant 0 : i32
    return %arg0, %c0_i32, %c0_i32_0 : i32, i32, i32
  }
  func.func @transform_5(%arg0: i32, %arg1: i32) -> (i32, i32, i32) {
    %c0_i32 = arith.constant 0 : i32
    %c0_i32_0 = arith.constant 0 : i32
    return %arg0, %arg1, %c0_i32 : i32, i32, i32
  }
  func.func @transform_6(%arg0: i32, %arg1: i32) -> (i32, i32, i32) {
    %c0_i32 = arith.constant 0 : i32
    %c0_i32_0 = arith.constant 0 : i32
    %c0_i32_1 = arith.constant 0 : i32
    return %arg0, %c0_i32, %c0_i32_0 : i32, i32, i32
  }
}

</mosaic_0001>

<bundles_post_ra>
// kernel: tpu_custom_call.1
= control target key start
LH: loop header
LB: loop body
LE: loop exit
PB: predicated region body
PF: predicated region fallthrough
CT: control target
= control target key end

     0   :  { %s5092_s0 = inlined_call_operand.hbm [shape: f32[4,128,128], index: 0, kind: input, shape index: {}]   ;;  %s5093_s1 = inlined_call_operand.hbm [shape: f32[4,512,128], index: 1, kind: input, shape index: {}]   ;;  %s5094_s2 = inlined_call_operand.hbm [shape: f32[4,1,512], index: 2, kind: input, shape index: {}]   ;;  %s5095_s3 = inlined_call_operand.hbm [shape: f32[4,128,512], index: 3, kind: input, shape index: {}]   ;;  %s5096_s4 = inlined_call_operand.vmem [shape: f32[4,1,128], index: 4, kind: input, shape index: {}]   ;;  %s5097_s5 = inlined_call_operand.hbm [shape: f32[4,128,128], index: 5, kind: output, shape index: {0}]   ;;  %s5098_s6 = inlined_call_operand.hbm [shape: f32[4,1,512], index: 6, kind: output, shape index: {1}]  }
   0x1   :  { %5174 = sst [smem:[#allocation43_spill]] %s5092_s0 }
   0x2   :  { %5175 = sst [smem:[#allocation44_spill]] %s5093_s1 }
   0x3   :  { %5176 = sst [smem:[#allocation45_spill]] %s5096_s4 }
   0x4   :  { %5177 = sst [smem:[#allocation46_spill]] %s5097_s5 }
   0x5   :  { %5178 = sst [smem:[#allocation47_spill]] %s5098_s6 }
   0x6   :  { %12 = vsyncpa [#allocation3], 0 }
   0x7   :  { %14 = vsyncpa [#allocation3 + $0x1], 0 }
   0x8   :  { %15 = vsyncpa [#allocation6], 0 }
   0x9   :  { %17 = vsyncpa [#allocation6 + $0x1], 0 }
   0xa   :  { %18 = vsyncpa [#allocation9], 0 }
   0xb   :  { %20 = vsyncpa [#allocation9 + $0x1], 0 }
   0xc   :  { %21 = vsyncpa [#allocation4], 0 }
   0xd   :  { %23 = vsyncpa [#allocation4 + $0x1], 0 }
   0xe   :  { %24 = vsyncpa [#allocation12], 0 }
   0xf   :  { %26 = vsyncpa [#allocation12 + $0x1], 0  ;;  %s2956_s21 = smov 0   ;;  %s2958_s22 = smov 0  }
  0x10   :  { %s2960_s23 = smov 0   ;;  %s2962_s24 = smov 0  }
  0x11   :  { %s2964_s25 = smov 0   ;;  %s2966_s26 = smov 0  }
  0x12   :  { %s2968_s27 = smov 0   ;;  %s2970_s28 = smov 0  }
  0x13   :  { %s2972_s29 = smov 0   ;;  %s2974_s30 = smov 0  }
  0x14   :  { %s2976_s7 = smov 0  }
  0x15 LB: > { %5179 = sst [smem:[#allocation18_spill]] %s2864_s21  ;;  %p61_p0 = scmp.eq.s32.totalorder %s2904_s7, 0  ;;  %s2904_s7 = sphi %s2976_s7, %s32_s7   ;;  %s2900_s30 = sphi %s2974_s30, %s5327_s30   ;;  %s2896_s29 = sphi %s2972_s29, %s5326_s29   ;;  %s2892_s28 = sphi %s2970_s28, %s5325_s28   ;;  %s2888_s27 = sphi %s2968_s27, %s5324_s27   ;;  %s2884_s26 = sphi %s2966_s26, %s5317_s26   ;;  %s2880_s25 = sphi %s2964_s25, %s5323_s25   ;;  %s2876_s24 = sphi %s2962_s24, %s5322_s24   ;;  %s2872_s23 = sphi %s2960_s23, %s5315_s23   ;;  %s2868_s22 = sphi %s2958_s22, %s5321_s22   ;;  %s2864_s21 = sphi %s2956_s21, %s5320_s21  }
  0x16   : > { %5180 = sst [smem:[#allocation19_spill]] %s2872_s23  ;;  %p5107_p1 = scmp.ne.s32.totalorder %s2872_s23, %s2868_s22 }
  0x17   : > { %5181 = sst [smem:[#allocation20_spill]] %s2876_s24  ;;  %p5110_p2 = scmp.ne.s32.totalorder %s2868_s22, %s2864_s21 }
  0x18   : > { %5182 = sst [smem:[#allocation21_spill]] %s2884_s26  ;;  %p5099_p3 = scmp.lt.s32.totalorder %s2904_s7, 8 }
  0x19   : > { %5183 = sst [smem:[#allocation22_spill]] %s2888_s27  ;;  %p88_p4 = por %p5107_p1, %p61_p0 }
  0x1a   : > { %s271_s9 = sand.u32 1, %s2904_s7   ;;  %s3025_s10 = sand.u32 1, %s2872_s23  }
  0x1b   : > { %s5100_s11 = sshll.u32 %s3025_s10, 9  ;;  %s5101_s12 = sshll.u32 %s2900_s30, 13 }
  0x1c   : > { %s5184_s1 = sld [smem:[#allocation44_spill]]  ;;  %s275_s16 = scalar_lea.vmem [#allocation5], %s5100_s11 }
  0x1d   : > { %s282_s17 = sshll.u32 %s275_s16, 4  ;;  %p3038_p5 = pnand %p5099_p3, %p88_p4  ;;  %s283_s17 = int_to_ptr.vmem [resolvable:$true] %s282_s17 }
  0x1e   : > { %p2321_p6 = scmp.ge.s32.totalorder %s2904_s7, 1  ;;  %p336_p7 = scmp.lt.s32.totalorder %s2904_s7, 9 }
  0x1f   : > { %s3044_s19 = scalar_lea.sflag [#allocation6], %s271_s9  ;;  %p5106_p8 = pneg %p3038_p5 }
  0x20   : > { %s2647_s20 = scalar_lea.vmem %s283_s17, 8192  ;;  %s2906_s13 = smov [#allocation5]  }
  0x21   : > { %p2648_p9 = scmp.ne.s32.totalorder %s283_s17, %s2647_s20  ;;  %s2652_s14 = sshll.u32 %s2906_s13, 4  ;;  %s2653_s14 = int_to_ptr.vmem [resolvable:$false] %s2652_s14 }
  0x22   : > { %s281_s15 = scalar_lea.hbm %s5184_s1, %s5101_s12  ;;  %s2654_s16 = scalar_lea.vmem %s2653_s14, 16384 }
  0x23   : > { %p2650_p10 = pnand %p2648_p9, %p5106_p8  ;;  %p2655_p12 = scmp.lt.s32.totalorder %s283_s17, %s2653_s14 }
  0x24   : > { %p2656_p13 = scmp.lt.s32.totalorder %s2654_s16, %s2647_s20 }
  0x25   : > { %p2651_p11 = pneg %p2650_p10 }
  0x26   : > { %p2657_p4 = por %p2656_p13, %p2655_p12 }
  0x28   : > { %p2658_p3 = pnand %p2657_p4, %p2651_p11 }
  0x2a   : > { %2661 = shalt.err (!%p2658_p3)
}
  0x2b   : > { %s5102_s11 = smov 128   ;;  %s5103_s9 = smov 8  }
  0x2c   : > { %2521 = dma.hbm_to_vmem [thread:$0]  (!%p3038_p5), %s281_s15, 8192, %s283_s17, %s3044_s19, %s5102_s11, %s5102_s11, %s5103_s9  }
  0x2d   : > { %p3061_p3 = pnand %p2321_p6, %p336_p7  ;;  %s3066_s13 = sadd.s32 4294967295, %s2904_s7  }
  0x2e   : > { %s2305_s14 = sadd.s32 4294967294, %s2904_s7   ;;  %s41_s16 = sadd.s32 1, %s2896_s29 }
  0x2f   : > { %p42_p9 = scmp.ge.s32.totalorder %s41_s16, 2  ;;  %s44_s15 = sadd.s32 1, %s2900_s30 }
  0x30   : > { %s53_s17 = sadd.s32 1, %s2884_s26  ;;  %p60_p6 = scmp.ne.s32.totalorder %s2884_s26, %s2880_s25 }
  0x31   : > { %s5329_s16 = smov (%p42_p9, %s41_s16), 0  ;;  %s5331_s15 = smov (!%p42_p9, %s44_s15), %s2900_s30 }
  0x32   : > { %5187 = sst [smem:[#allocation23_spill]] %s5329_s16  ;;  %s49_s12 = ssub.s32 %s2896_s29, %s5329_s16 }
  0x33   : > { %p3084_p7 = por %p61_p0, %p60_p6  ;;  %p46_p10 = scmp.ge.s32.totalorder %s5331_s15, 4 }
  0x34   : > { %p66_p11 = scmp.ne.s32.totalorder %s2880_s25, %s2876_s24  ;;  %p67_p12 = scmp.eq.s32.totalorder %s3066_s13, 0 }
  0x35   : > { %p196_p13 = scmp.eq.s32.totalorder %s3066_s13, 7  ;;  %s5333_s15 = smov (%p46_p10, %s5331_s15), 0 }
  0x36   : > { %5189 = sst [smem:[#allocation24_spill]] %s5333_s15  ;;  %p3097_p0 = por %p67_p12, %p66_p11 }
  0x37   : > { %p3104_p4 = por %p5110_p2, %p67_p12  ;;  %s48_s1 = ssub.s32 %s2900_s30, %s5333_s15 }
  0x38   : > { %p3115_p9 = por %p196_p13, %p60_p6  ;;  %s50_s5 = sor.u32 %s49_s12, %s48_s1 }
  0x39   : > { %s5191_s8 = scalar_select %p3104_p4, 1, 0 }
  0x3a   : > { %s5192_s16 = scalar_select %p3115_p9, 1, 0 }
  0x3b   : > { %p77_p10 = scmp.eq.s32.totalorder %s48_s1, 0  ;;  %p51_p8 = scmp.eq.s32.totalorder %s50_s5, 0 }
  0x3c   : > { %5193 = sst [smem:[#allocation25_spill]] %s5192_s16  ;;  %p202_p1 = scmp.eq.s32.totalorder %s2305_s14, 7 }
  0x3d   : > { %s5194_s6 = sadd.s32 1, %s2872_s23  ;;  %p5199_p6 = scmp.ne.s32.totalorder %s2872_s23, %s2868_s22 }
  0x3e   : > { %s3122_s27 = scalar_select %p77_p10, %s2872_s23, %s5194_s6  }
  0x3f   : > { %s3125_s4 = scalar_select %p51_p8, %s2884_s26, %s53_s17  }
  0x40   : > { %5195 = sst [smem:[#allocation26_spill]] %s3122_s27  ;;  %p3130_p12 = por %p202_p1, %p66_p11 }
  0x41   : > { %5196 = sst [smem:[#allocation27_spill]] %s3125_s4  ;;  %p3139_p2 = por %p196_p13, %p5199_p6 }
  0x42   : > { %s5197_s15 = scalar_select %p3130_p12, 1, 0 }
  0x43   : > { %s5200_s12 = scalar_select %p3139_p2, 1, 0 }
  0x44   : > { %5198 = sst [smem:[#allocation28_spill]] %s5197_s15  ;;  %p5202_p9 = scmp.ne.s32.totalorder %s2868_s22, %s2864_s21 }
  0x45   : > { %5201 = sst [smem:[#allocation29_spill]] %s5200_s12  ;;  %s248_s5 = sand.u32 1, %s2884_s26  }
  0x46   : > { %p3146_p4 = por %p202_p1, %p5202_p9  ;;  %s2308_s6 = sshll.u32 %s248_s5, 6 }
  0x47   : > { %s2309_s14 = sshll.u32 %s2896_s29, 3  ;;  %s2310_s17 = sshll.u32 %s2900_s30, 4 }
  0x48   : > { %s5203_s1 = scalar_select %p3146_p4, 1, 0 }
  0x49   : > { %s252_s4 = scalar_lea.vmem [#allocation2], %s2308_s6  ;;  %s258_s24 = sadd.s32 %s2310_s17, %s2309_s14 }
  0x4a   : > { %5204 = sst [smem:[#allocation30_spill]] %s5203_s1  ;;  %s261_s27 = sshll.u32 %s252_s4, 4  ;;  %s262_s27 = int_to_ptr.vmem [resolvable:$true] %s261_s27 }
  0x4b   : > { %s2311_s15 = sshll.u32 %s258_s24, 7  ;;  %p5205_p8 = scmp.lt.s32.totalorder %s2904_s7, 8 }
  0x4c   : > { %s5207_s0 = sld [smem:[#allocation43_spill]]  ;;  %s2315_s26 = sshll.u32 %s3025_s10, 2 }
  0x4d   : > { %p3157_p11 = pnand %p5205_p8, %p3084_p7  ;;  %s249_s12 = scalar_lea.sflag [#allocation3], %s248_s5 }
  0x4e   : > { %s2675_s6 = scalar_lea.vmem %s262_s27, 1024  ;;  %s2909_s4 = smov [#allocation2]  }
  0x4f   : > { %p2664_p1 = pneg %p3157_p11  ;;  %p2676_p13 = scmp.ne.s32.totalorder %s262_s27, %s2675_s6 }
  0x50   : > { %s2680_s24 = sshll.u32 %s2909_s4, 4  ;;  %s2681_s24 = int_to_ptr.vmem [resolvable:$false] %s2680_s24 }
  0x51   : > { %p2678_p9 = pnand %p2676_p13, %p2664_p1  ;;  %s2682_s11 = scalar_lea.vmem %s2681_s24, 2048 }
  0x52   : > { %s260_s1 = scalar_lea.hbm %s5207_s0, %s2311_s15  ;;  %p2683_p7 = scmp.lt.s32.totalorder %s262_s27, %s2681_s24 }
  0x53   : > { %p2679_p10 = pneg %p2678_p9  ;;  %p2684_p6 = scmp.lt.s32.totalorder %s2682_s11, %s2675_s6 }
  0x55   : > { %p2685_p8 = por %p2684_p6, %p2683_p7 }
  0x57   : > { %p2686_p4 = pnand %p2685_p8, %p2679_p10 }
  0x59   : > { %2689 = shalt.err (!%p2686_p4)
}
  0x5a   : > { %s5208_s21 = smov 8   ;;  %s5209_s16 = smov 128  }
  0x5b   : > { %2518 = dma.hbm_to_vmem [thread:$0]  (!%p3157_p11), %s260_s1, 1024, %s262_s27, %s249_s12, %s5209_s16, %s5209_s16, %s5208_s21  }
  0x5c   : > { %s2404_s15 = sshll.u32 %s2900_s30, 6  ;;  %s296_s5 = scalar_lea.vmem [#allocation7], %s2315_s26 }
  0x5d   : > { %s304_s14 = sshll.u32 %s296_s5, 4  ;;  %s302_s0 = scalar_lea.hbm %s5094_s2, %s2404_s15  ;;  %s305_s14 = int_to_ptr.vmem [resolvable:$true] %s304_s14 }
  0x5e   : > { %s2703_s6 = scalar_lea.vmem %s305_s14, 64  ;;  %p5210_p4 = pneg %p3038_p5 }
  0x5f   : > { %p2704_p1 = scmp.ne.s32.totalorder %s305_s14, %s2703_s6  ;;  %s2910_s23 = smov [#allocation7]  }
  0x60   : > { %s2708_s24 = sshll.u32 %s2910_s23, 4  ;;  %s2709_s24 = int_to_ptr.vmem [resolvable:$false] %s2708_s24 }
  0x61   : > { %p2706_p13 = pnand %p2704_p1, %p5210_p4  ;;  %s2710_s11 = scalar_lea.vmem %s2709_s24, 128 }
  0x62   : > { %p2711_p10 = scmp.lt.s32.totalorder %s305_s14, %s2709_s24  ;;  %p2712_p11 = scmp.lt.s32.totalorder %s2710_s11, %s2703_s6 }
  0x63   : > { %p2707_p9 = pneg %p2706_p13 }
  0x64   : > { %p2713_p7 = por %p2712_p11, %p2711_p10 }
  0x66   : > { %p2714_p6 = pnand %p2713_p7, %p2707_p9 }
  0x68   : > { %2717 = shalt.err (!%p2714_p6)
}
  0x69   : > { %2524 = dma.hbm_to_vmem [thread:$0]  (!%p3038_p5), %s302_s0, 64, %s305_s14, %s3044_s19  }
  0x6a   : > { %s5211_s26 = sshll.u32 %s2900_s30, 13  ;;  %s5212_s21 = sshll.u32 %s3025_s10, 9 }
  0x6b   : > { %s321_s1 = scalar_lea.hbm %s5095_s3, %s5211_s26  ;;  %s315_s16 = scalar_lea.vmem [#allocation8], %s5212_s21 }
  0x6c   : > { %s322_s15 = sshll.u32 %s315_s16, 4  ;;  %s312_s5 = scalar_lea.sflag [#allocation9], %s3025_s10  ;;  %s323_s15 = int_to_ptr.vmem [resolvable:$true] %s322_s15 }
  0x6d   : > { %s2731_s17 = scalar_lea.vmem %s323_s15, 8192  ;;  %p5213_p1 = pmov %p5210_p4 }
  0x6e   : > { %p2732_p8 = scmp.ne.s32.totalorder %s323_s15, %s2731_s17  ;;  %s2911_s4 = smov [#allocation8]  }
  0x6f   : > { %s2736_s6 = sshll.u32 %s2911_s4, 4  ;;  %s2737_s6 = int_to_ptr.vmem [resolvable:$false] %s2736_s6 }
  0x70   : > { %p2734_p4 = pnand %p2732_p8, %p5213_p1  ;;  %s2738_s0 = scalar_lea.vmem %s2737_s6, 16384 }
  0x71   : > { %p2739_p9 = scmp.lt.s32.totalorder %s323_s15, %s2737_s6  ;;  %p2740_p10 = scmp.lt.s32.totalorder %s2738_s0, %s2731_s17 }
  0x72   : > { %p2735_p13 = pneg %p2734_p4 }
  0x73   : > { %p2741_p11 = por %p2740_p10, %p2739_p9 }
  0x75   : > { %p2742_p7 = pnand %p2741_p11, %p2735_p13 }
  0x77   : > { %2745 = shalt.err (!%p2742_p7)
}
  0x78   : > { %s2912_s19 = smov 512   ;;  %s2913_s14 = smov 32  }
  0x79   : > { %2527 = dma.hbm_to_vmem [thread:$0]  (!%p3038_p5), %s321_s1, 8192, %s323_s15, %s312_s5, %s2912_s19, %s2912_s19, %s2913_s14  }
  0x7a   : > { %340 = sbr.rel (%p3061_p3) target bundleno = 1919 (0x77f), region = 40 }
  0x7f   : > { %s3198_s10 = sand.u32 1, %s2880_s25  }
  0x80   : > { %s2322_s23 = sshll.u32 %s3198_s10, 6  ;;  %s343_s24 = scalar_lea.sflag [#allocation3], %s3198_s10 }
  0x81   : > { %s3204_s11 = scalar_lea.vmem [#allocation2], %s2322_s23 }
  0x82   : > { %2843 = dma.done.wait (%p3097_p0), %s343_s24, 1024  }
  0x83   : > { %2845 = vsyncadd (%p3097_p0), %s343_s24, 4294966272  ;;  %s351_s18 = sand.u32 1, %s3066_s13   ;;  %s3212_s20 = sand.u32 1, %s2868_s22  }
  0x84   : > { %s2323_s26 = sshll.u32 %s3212_s20, 9  ;;  %s352_s27 = scalar_lea.sflag [#allocation6], %s351_s18 }
  0x85   : > { %s3215_s12 = scalar_lea.vmem [#allocation5], %s2323_s26  ;;  %p5214_p5 = scmp.ne.s32.totalorder %s5191_s8, 0 }
  0x87   : > { %2847 = dma.done.wait (%p5214_p5), %s352_s27, 8256  }
  0x88   : > { %2849 = vsyncadd (%p5214_p5), %s352_s27, 4294959040  ;;  %s2324_s9 = sshll.u32 %s3212_s20, 2  ;;  %s370_s13 = scalar_lea.sflag [#allocation9], %s3212_s20 }
  0x89   : > { %s3224_s1 = scalar_lea.vmem [#allocation7], %s2324_s9  ;;  %s3227_s21 = scalar_lea.vmem [#allocation8], %s2323_s26 }
  0x8a   : > { %2851 = dma.done.wait (%p5214_p5), %s370_s13, 8192  }
  0x8b   : > { %2853 = vsyncadd (%p5214_p5), %s370_s13, 4294959104  ;;  %v484_v0 = vld [vmem:[%s3215_s12 + $0xf8] sm:$0xff]  ;;  %v483_v4 = vld [vmem:[%s3215_s12 + $0xf0] sm:$0xff]  ;;  %p426_p3 = scmp.lt.s32.totalorder %s2892_s28, 3  ;;  %s5215_s5 = sld [smem:[#allocation45_spill]] }
  0x8c   : > { %v468_v1 = vld [vmem:[%s3215_s12 + $0x78] sm:$0xff]  ;;  %2407 = vmatprep.subr.mxu0 %v484_v0  ;;  %v515_v5 = vld [vmem:[%s3215_s12 + $0x1f0] sm:$0xff]  ;;  %v482_v8 = vld [vmem:[%s3215_s12 + $0xe8] sm:$0xff]  ;;  %s4744_s4 = scalar_lea.vmem [#allocation10], %s2322_s23  ;;  %s4748_s6 = scalar_lea.vmem [#allocation11], %s2324_s9 }
  0x8d   : > { %v516_v2 = vld [vmem:[%s3215_s12 + $0x1f8] sm:$0xff]  ;;  %2408 = vmatpush3.xpose.msra.mxu0 %v468_v1  ;;  %v467_v6 = vld [vmem:[%s3215_s12 + $0x70] sm:$0xff]  ;;  %v514_v9 = vld [vmem:[%s3215_s12 + $0x1e8] sm:$0xff]  ;;  %s427_s8 = scalar_select %p426_p3, %s2892_s28, 3 }
  0x8e   : > { %2455 = vmatprep.subr.mxu1 %v516_v2  ;;  %v500_v3 = vld [vmem:[%s3215_s12 + $0x178] sm:$0xff]  ;;  %2409 = vmatprep.subr.mxu0 %v483_v4  ;;  %v499_v7 = vld [vmem:[%s3215_s12 + $0x170] sm:$0xff]  ;;  %v466_v10 = vld [vmem:[%s3215_s12 + $0x68] sm:$0xff]  ;;  %s5238_s0 = sld [smem:[#allocation22_spill]] }
  0x8f   : > { %2456 = vmatpush3.xpose.msra.mxu1 %v500_v3  ;;  %v498_v11 = vld [vmem:[%s3215_s12 + $0x168] sm:$0xff]  ;;  %v481_v12 = vld [vmem:[%s3215_s12 + $0xe0] sm:$0xff]  ;;  %v480_v16 = vld [vmem:[%s3215_s12 + $0xd8] sm:$0xff] }
  0x90   : > { %2457 = vmatprep.subr.mxu1 %v515_v5  ;;  %v513_v13 = vld [vmem:[%s3215_s12 + $0x1e0] sm:$0xff]  ;;  %v512_v17 = vld [vmem:[%s3215_s12 + $0x1d8] sm:$0xff]  ;;  %v479_v20 = vld [vmem:[%s3215_s12 + $0xd0] sm:$0xff] }
  0x91   : > { %2410 = vmatpush3.xpose.msra.mxu0 %v467_v6  ;;  %v465_v14 = vld [vmem:[%s3215_s12 + $0x60] sm:$0xff]  ;;  %v464_v18 = vld [vmem:[%s3215_s12 + $0x58] sm:$0xff]  ;;  %v511_v21 = vld [vmem:[%s3215_s12 + $0x1d0] sm:$0xff]  ;;  %s428_s17 = scalar_lea.vmem %s5215_s5, %s427_s8 }
  0x92   : > { %2411 = vmatprep.subr.mxu0 %v482_v8  ;;  %v497_v15 = vld [vmem:[%s3215_s12 + $0x160] sm:$0xff]  ;;  %v496_v19 = vld [vmem:[%s3215_s12 + $0x158] sm:$0xff]  ;;  %v463_v22 = vld [vmem:[%s3215_s12 + $0x50] sm:$0xff] }
  0x93   : > { %2458 = vmatpush3.xpose.msra.mxu1 %v499_v7  ;;  %v495_v23 = vld [vmem:[%s3215_s12 + $0x150] sm:$0xff]  ;;  %v478_v24 = vld [vmem:[%s3215_s12 + $0xc8] sm:$0xff]  ;;  %v430_v26 = vld [vmem:[%s3204_s11] sm:$0xff] }
  0x94   : > { %2459 = vmatprep.subr.mxu1 %v514_v9  ;;  %v510_v25 = vld [vmem:[%s3215_s12 + $0x1c8] sm:$0xff]  ;;  %v3265_v27 = vld [vmem:[%s428_s17] ss:$0 sm:$0xff]  ;;  %v476_v35 = vld [vmem:[%s3215_s12 + $0xb8] sm:$0xff]  ;;  %p2361_p0 = scmp.ne.s32.totalorder %s5238_s0, 0 }
  0x95   : > { %2412 = vmatpush3.xpose.msra.mxu0 %v466_v10  ;;  %5216 = vst [vmem:[#allocation31_spill] sm:$0xff] %v3265_v27  ;;  %v3268_v28 = vsub.f32 %v430_v26, %v3265_v27  ;;  %v462_v29 = vld [vmem:[%s3215_s12 + $0x48] sm:$0xff]  ;;  %v477_v31 = vld [vmem:[%s3215_s12 + $0xc0] sm:$0xff]  ;;  %v508_v36 = vld [vmem:[%s3215_s12 + $0x1b8] sm:$0xff] }
  0x96   : > { %2413 = vmatprep.subr.mxu0 %v481_v12  ;;  %v494_v30 = vld [vmem:[%s3215_s12 + $0x148] sm:$0xff]  ;;  %v509_v32 = vld [vmem:[%s3215_s12 + $0x1c0] sm:$0xff]  ;;  %v460_v37 = vld [vmem:[%s3215_s12 + $0x38] sm:$0xff] }
  0x97   : > { %2460 = vmatpush3.xpose.msra.mxu1 %v498_v11  ;;  %2439 = vmatprep.mubr.f32.mxu0 %v3268_v28  ;;  %v461_v33 = vld [vmem:[%s3215_s12 + $0x40] sm:$0xff]  ;;  %v492_v38 = vld [vmem:[%s3215_s12 + $0x138] sm:$0xff]  ;;  %v475_v39 = vld [vmem:[%s3215_s12 + $0xb0] sm:$0xff] }
  0x98   : > { %2461 = vmatprep.subr.mxu1 %v513_v13  ;;  %2487 = vmatprep.mubr.f32.mxu1 %v3268_v28  ;;  %v493_v34 = vld [vmem:[%s3215_s12 + $0x140] sm:$0xff]  ;;  %v507_v40 = vld [vmem:[%s3215_s12 + $0x1b0] sm:$0xff]  ;;  %v474_v43 = vld [vmem:[%s3215_s12 + $0xa8] sm:$0xff] }
  0x99   : > { %2414 = vmatpush3.xpose.msra.mxu0 %v465_v14  ;;  %v459_v41 = vld [vmem:[%s3215_s12 + $0x30] sm:$0xff]  ;;  %v506_v44 = vld [vmem:[%s3215_s12 + $0x1a8] sm:$0xff]  ;;  %v473_v47 = vld [vmem:[%s3215_s12 + $0xa0] sm:$0xff] }
  0x9a   : > { %2415 = vmatprep.subr.mxu0 %v480_v16  ;;  %v491_v42 = vld [vmem:[%s3215_s12 + $0x130] sm:$0xff]  ;;  %v458_v45 = vld [vmem:[%s3215_s12 + $0x28] sm:$0xff]  ;;  %v505_v48 = vld [vmem:[%s3215_s12 + $0x1a0] sm:$0xff] }
  0x9b   : > { %2462 = vmatpush3.xpose.msra.mxu1 %v497_v15  ;;  %v490_v46 = vld [vmem:[%s3215_s12 + $0x128] sm:$0xff]  ;;  %v457_v49 = vld [vmem:[%s3215_s12 + $0x20] sm:$0xff]  ;;  %v472_v51 = vld [vmem:[%s3215_s12 + $0x98] sm:$0xff] }
  0x9c   : > { %2463 = vmatprep.subr.mxu1 %v512_v17  ;;  %v489_v50 = vld [vmem:[%s3215_s12 + $0x120] sm:$0xff]  ;;  %v504_v52 = vld [vmem:[%s3215_s12 + $0x198] sm:$0xff]  ;;  %v471_v55 = vld [vmem:[%s3215_s12 + $0x90] sm:$0xff]  ;;  %v5123_v17 = vlaneseq }
  0x9d   : > { %2416 = vmatpush3.xpose.msra.mxu0 %v464_v18  ;;  %v456_v53 = vld [vmem:[%s3215_s12 + $0x18] sm:$0xff]  ;;  %v503_v56 = vld [vmem:[%s3215_s12 + $0x190] sm:$0xff]  ;;  %v470_v59 = vld [vmem:[%s3215_s12 + $0x88] sm:$0xff] }
  0x9e   : > { %2417 = vmatprep.subr.mxu0 %v479_v20  ;;  %v488_v54 = vld [vmem:[%s3215_s12 + $0x118] sm:$0xff]  ;;  %v455_v57 = vld [vmem:[%s3215_s12 + $0x10] sm:$0xff]  ;;  %v502_v60 = vld [vmem:[%s3215_s12 + $0x188] sm:$0xff]  ;;  %v3327_v18 = vshrl.u32 %v5123_v17, 7 }
  0x9f   : > { %2464 = vmatpush3.xpose.msra.mxu1 %v496_v19  ;;  %v487_v58 = vld [vmem:[%s3215_s12 + $0x110] sm:$0xff]  ;;  %v454_v61 = vld [vmem:[%s3215_s12 + $0x8] sm:$0xff]  ;;  %v469_v63 = vld [vmem:[%s3215_s12 + $0x80] sm:$0xff] }
  0xa0   : > { %2465 = vmatprep.subr.mxu1 %v511_v21  ;;  %v486_v62 = vld [vmem:[%s3215_s12 + $0x108] sm:$0xff]  ;;  %v501_v0 = vld [vmem:[%s3215_s12 + $0x180] sm:$0xff]  ;;  %v432_v5 = vld [vmem:[%s3204_s11 + $0x10] sm:$0xff]  ;;  %5217 = vst [vmem:[#allocation32_spill] sm:$0xff] %v3327_v18  ;;  %v521_v19 = vsub.s32 0, %v3327_v18  ;;  %v529_v20 = vsub.s32 2, %v3327_v18 }
  0xa1   : > { %2418 = vmatpush3.xpose.msra.mxu0 %v463_v22  ;;  %v453_v1 = vld [vmem:[%s3215_s12] sm:$0xff]  ;;  %v431_v3 = vld [vmem:[%s3204_s11 + $0x8] sm:$0xff]  ;;  %v447_v6 = vsub.f32 %v432_v5, %v3265_v27  ;;  %v433_v7 = vld [vmem:[%s3204_s11 + $0x18] sm:$0xff]  ;;  %v525_v22 = vsub.s32 1, %v3327_v18 }
  0xa2   : > { %2419 = vmatprep.subr.mxu0 %v478_v24  ;;  %v485_v2 = vld [vmem:[%s3215_s12 + $0x100] sm:$0xff]  ;;  %v446_v4 = vsub.f32 %v431_v3, %v3265_v27  ;;  %v448_v8 = vsub.f32 %v433_v7, %v3265_v27  ;;  %v435_v11 = vld [vmem:[%s3204_s11 + $0x28] sm:$0xff]  ;;  %v436_v13 = vld [vmem:[%s3204_s11 + $0x30] sm:$0xff] }
  0xa3   : > { %2466 = vmatpush3.xpose.msra.mxu1 %v495_v23  ;;  %v434_v9 = vld [vmem:[%s3204_s11 + $0x20] sm:$0xff]  ;;  %v450_v12 = vsub.f32 %v435_v11, %v3265_v27  ;;  %v451_v14 = vsub.f32 %v436_v13, %v3265_v27  ;;  %v437_v15 = vld [vmem:[%s3204_s11 + $0x38] sm:$0xff]  ;;  %v533_v23 = vsub.s32 3, %v3327_v18 }
  0xa4   : > { %2467 = vmatprep.subr.mxu1 %v510_v25  ;;  %v449_v10 = vsub.f32 %v434_v9, %v3265_v27  ;;  %v452_v16 = vsub.f32 %v437_v15, %v3265_v27  ;;  %v517_v21 = vld [vmem:[%s3224_s1] sm:$0xf] }
  0xa5   : > { %2420 = vmatpush3.xpose.msra.mxu0 %v462_v29  ;;  %v3334_v24 = vrot.slane %v517_v21, %v521_v19  ;;  %v3336_v25 = vrot.slane %v517_v21, %v529_v20  ;;  %v3338_v26 = vrot.slane %v517_v21, %v525_v22 }
  0xa6   : > { %2421 = vmatprep.subr.mxu0 %v477_v31 }
  0xa7   : > { %2468 = vmatpush3.xpose.msra.mxu1 %v494_v30 }
  0xa8   : > { %2469 = vmatprep.subr.mxu1 %v509_v32 }
  0xa9   : > { %2422 = vmatpush3.xpose.msra.mxu0 %v461_v33 }
  0xaa   : > { %2423 = vmatprep.subr.mxu0 %v476_v35 }
  0xab   : > { %2470 = vmatpush3.xpose.msra.mxu1 %v493_v34 }
  0xac   : > { %2471 = vmatprep.subr.mxu1 %v508_v36 }
  0xad   : > { %2424 = vmatpush3.xpose.msra.mxu0 %v460_v37 }
  0xae   : > { %2425 = vmatprep.subr.mxu0 %v475_v39 }
  0xaf   : > { %2472 = vmatpush3.xpose.msra.mxu1 %v492_v38 }
  0xb0   : > { %2473 = vmatprep.subr.mxu1 %v507_v40 }
  0xb1   : > { %2426 = vmatpush3.xpose.msra.mxu0 %v459_v41 }
  0xb2   : > { %2427 = vmatprep.subr.mxu0 %v474_v43 }
  0xb3   : > { %2474 = vmatpush3.xpose.msra.mxu1 %v491_v42 }
  0xb4   : > { %2475 = vmatprep.subr.mxu1 %v506_v44 }
  0xb5   : > { %2428 = vmatpush3.xpose.msra.mxu0 %v458_v45 }
  0xb6   : > { %2429 = vmatprep.subr.mxu0 %v473_v47 }
  0xb7   : > { %2476 = vmatpush3.xpose.msra.mxu1 %v490_v46 }
  0xb8   : > { %2477 = vmatprep.subr.mxu1 %v505_v48 }
  0xb9   : > { %2430 = vmatpush3.xpose.msra.mxu0 %v457_v49 }
  0xba   : > { %2431 = vmatprep.subr.mxu0 %v472_v51 }
  0xbb   : > { %2478 = vmatpush3.xpose.msra.mxu1 %v489_v50 }
  0xbc   : > { %2479 = vmatprep.subr.mxu1 %v504_v52 }
  0xbd   : > { %2432 = vmatpush3.xpose.msra.mxu0 %v456_v53 }
  0xbe   : > { %2433 = vmatprep.subr.mxu0 %v471_v55 }
  0xbf   : > { %2480 = vmatpush3.xpose.msra.mxu1 %v488_v54 }
  0xc0   : > { %2481 = vmatprep.subr.mxu1 %v503_v56 }
  0xc1   : > { %2434 = vmatpush3.xpose.msra.mxu0 %v455_v57 }
  0xc2   : > { %2435 = vmatprep.subr.mxu0 %v470_v59 }
  0xc3   : > { %2482 = vmatpush3.xpose.msra.mxu1 %v487_v58 }
  0xc4   : > { %2483 = vmatprep.subr.mxu1 %v502_v60 }
  0xc5   : > { %2436 = vmatpush3.xpose.msra.mxu0 %v454_v61 }
  0xc6   : > { %2437 = vmatprep.subr.mxu0 %v469_v63 }
  0xc7   : > { %2484 = vmatpush3.xpose.msra.mxu1 %v486_v62 }
  0xc8   : > { %2485 = vmatprep.subr.mxu1 %v501_v0 }
  0xc9   : > { %2438 = vmatpush3.xpose.msra.mxu0 %v453_v1 }
  0xcb   : > { %2486 = vmatpush3.xpose.msra.mxu1 %v485_v2 }
  0xcc   : > { %2440 = vmatmul.mubr.f32.vlgmr.msra.gmra.mxu0 %v3268_v28 }
  0xcd   : > { %2441 = vmatprep.mubr.f32.mxu0 %v446_v4 }
  0xce   : > { %2488 = vmatmul.mubr.f32.vlgmr.msra.gmra.mxu1 %v3268_v28  ;;  %v3340_v28 = vrot.slane %v517_v21, %v533_v23 }
  0xcf   : > { %2489 = vmatprep.mubr.f32.mxu1 %v446_v4 }
  0xd0   : > { %2442 = vmatmul.mubr.f32.gmra.mxu0 %v446_v4 }
  0xd1   : > { %2443 = vmatprep.mubr.f32.mxu0 %v447_v6 }
  0xd2   : > { %2490 = vmatmul.mubr.f32.gmra.mxu1 %v446_v4 }
  0xd3   : > { %2491 = vmatprep.mubr.f32.mxu1 %v447_v6 }
  0xd4   : > { %2444 = vmatmul.mubr.f32.gmra.mxu0 %v447_v6 }
  0xd5   : > { %2445 = vmatprep.mubr.f32.mxu0 %v448_v8 }
  0xd6   : > { %2492 = vmatmul.mubr.f32.gmra.mxu1 %v447_v6 }
  0xd7   : > { %2493 = vmatprep.mubr.f32.mxu1 %v448_v8 }
  0xd8   : > { %2446 = vmatmul.mubr.f32.gmra.mxu0 %v448_v8 }
  0xd9   : > { %2447 = vmatprep.mubr.f32.mxu0 %v449_v10 }
  0xda   : > { %2494 = vmatmul.mubr.f32.gmra.mxu1 %v448_v8 }
  0xdb   : > { %2495 = vmatprep.mubr.f32.mxu1 %v449_v10 }
  0xdc   : > { %2448 = vmatmul.mubr.f32.gmra.mxu0 %v449_v10 }
  0xdd   : > { %2449 = vmatprep.mubr.f32.mxu0 %v450_v12 }
  0xde   : > { %2496 = vmatmul.mubr.f32.gmra.mxu1 %v449_v10 }
  0xdf   : > { %2497 = vmatprep.mubr.f32.mxu1 %v450_v12 }
  0xe0   : > { %2450 = vmatmul.mubr.f32.gmra.mxu0 %v450_v12 }
  0xe1   : > { %2451 = vmatprep.mubr.f32.mxu0 %v451_v14 }
  0xe2   : > { %2498 = vmatmul.mubr.f32.gmra.mxu1 %v450_v12 }
  0xe3   : > { %2499 = vmatprep.mubr.f32.mxu1 %v451_v14 }
  0xe4   : > { %2452 = vmatmul.mubr.f32.gmra.mxu0 %v451_v14 }
  0xe5   : > { %2453 = vmatprep.mubr.f32.mxu0 %v452_v16 }
  0xe6   : > { %2500 = vmatmul.mubr.f32.gmra.mxu1 %v451_v14 }
  0xe7   : > { %2501 = vmatprep.mubr.f32.mxu1 %v452_v16 }
  0xe8   : > { %2454 = vmatmul.mubr.f32.gmra.mxu0 %v452_v16 }
  0xea   : > { %2502 = vmatmul.mubr.f32.gmra.mxu1 %v452_v16 }
 0x18c   : > { %v605_v29 = vpop.f32.mrf.mxu0 }
 0x18d   : > { %v3343_v31 = vadd.f32 %v605_v29, %v3334_v24 }
 0x18e   : > { %v718_v30 = vpop.f32.mrf.mxu1  ;;  %v607_v33 = vpop.f32.mrf.mxu0 }
 0x18f   : > { %v3346_v32 = vadd.f32 %v718_v30, %v3336_v25  ;;  %v3350_v36 = vadd.f32 %v607_v33, %v3338_v26 }
 0x190   : > { %v720_v34 = vpop.f32.mrf.mxu1  ;;  %v611_v39 = vpop.f32.mrf.mxu0 }
 0x191   : > { %v3354_v38 = vadd.f32 %v720_v34, %v3340_v28  ;;  %v3358_v42 = vadd.f32 %v611_v39, %v3334_v24  ;;  %v765_v47 = vmax.f32 %v3343_v31, %v3350_v36 }
 0x192   : > { %v724_v40 = vpop.f32.mrf.mxu1  ;;  %v613_v45 = vpop.f32.mrf.mxu0 }
 0x193   : > { %v3362_v44 = vadd.f32 %v724_v40, %v3336_v25  ;;  %v3368_v49 = vadd.f32 %v613_v45, %v3338_v26  ;;  %v766_v54 = vmax.f32 %v765_v47, %v3346_v32 }
 0x194   : > { %v726_v46 = vpop.f32.mrf.mxu1  ;;  %v617_v52 = vpop.f32.mrf.mxu0 }
 0x195   : > { %v3372_v51 = vadd.f32 %v726_v46, %v3340_v28  ;;  %v3377_v56 = vadd.f32 %v617_v52, %v3334_v24  ;;  %v767_v60 = vmax.f32 %v766_v54, %v3354_v38  ;;  %v770_v62 = vmax.f32 %v3358_v42, %v3368_v49 }
 0x196   : > { %v730_v53 = vpop.f32.mrf.mxu1  ;;  %v619_v59 = vpop.f32.mrf.mxu0 }
 0x197   : > { %v3381_v58 = vadd.f32 %v730_v53, %v3336_v25  ;;  %v3388_v0 = vadd.f32 %v619_v59, %v3338_v26  ;;  %768 = vmax.xlane.f32.xlu0 %v767_v60  ;;  %v771_v5 = vmax.f32 %v770_v62, %v3362_v44 }
 0x198   : > { %v732_v61 = vpop.f32.mrf.mxu1  ;;  %v623_v3 = vpop.f32.mrf.mxu0 }
 0x199   : > { %v3392_v2 = vadd.f32 %v732_v61, %v3340_v28  ;;  %v3397_v7 = vadd.f32 %v623_v3, %v3334_v24  ;;  %v772_v11 = vmax.f32 %v771_v5, %v3372_v51  ;;  %v775_v13 = vmax.f32 %v3377_v56, %v3388_v0 }
 0x19a   : > { %v736_v4 = vpop.f32.mrf.mxu1  ;;  %v625_v10 = vpop.f32.mrf.mxu0 }
 0x19b   : > { %v3401_v9 = vadd.f32 %v736_v4, %v3336_v25  ;;  %v3408_v15 = vadd.f32 %v625_v10, %v3338_v26  ;;  %773 = vmax.xlane.f32.xlu0 %v772_v11  ;;  %v776_v22 = vmax.f32 %v775_v13, %v3381_v58 }
 0x19c   : > { %v738_v12 = vpop.f32.mrf.mxu1  ;;  %v629_v20 = vpop.f32.mrf.mxu0 }
 0x19d   : > { %v3412_v19 = vadd.f32 %v738_v12, %v3340_v28  ;;  %v3417_v29 = vadd.f32 %v629_v20, %v3334_v24  ;;  %v777_v39 = vmax.f32 %v776_v22, %v3392_v2  ;;  %v780_v45 = vmax.f32 %v3397_v7, %v3408_v15 }
 0x19e   : > { %v742_v21 = vpop.f32.mrf.mxu1  ;;  %v631_v34 = vpop.f32.mrf.mxu0 }
 0x19f   : > { %v3421_v33 = vadd.f32 %v742_v21, %v3336_v25  ;;  %v3428_v47 = vadd.f32 %v631_v34, %v3338_v26  ;;  %778 = vmax.xlane.f32.xlu1 %v777_v39  ;;  %v781_v60 = vmax.f32 %v780_v45, %v3401_v9 }
 0x1a0   : > { %v744_v40 = vpop.f32.mrf.mxu1  ;;  %v635_v54 = vpop.f32.mrf.mxu0 }
 0x1a1   : > { %v3432_v53 = vadd.f32 %v744_v40, %v3340_v28  ;;  %v3437_v62 = vadd.f32 %v635_v54, %v3334_v24  ;;  %v782_v10 = vmax.f32 %v781_v60, %v3412_v19  ;;  %v785_v12 = vmax.f32 %v3417_v29, %v3428_v47 }
 0x1a2   : > { %v748_v59 = vpop.f32.mrf.mxu1  ;;  %v637_v5 = vpop.f32.mrf.mxu0 }
 0x1a3   : > { %v3441_v4 = vadd.f32 %v748_v59, %v3336_v25  ;;  %v3448_v20 = vadd.f32 %v637_v5, %v3338_v26  ;;  %783 = vmax.xlane.f32.xlu1 %v782_v10  ;;  %v786_v40 = vmax.f32 %v785_v12, %v3421_v33 }
 0x1a4   : > { %v750_v11 = vpop.f32.mrf.mxu1  ;;  %v641_v34 = vpop.f32.mrf.mxu0 }
 0x1a5   : > { %5218 = vst [vmem:[#allocation33_spill] sm:$0xff] %v3441_v4  ;;  %v3452_v22 = vadd.f32 %v750_v11, %v3340_v28  ;;  %v3457_v54 = vadd.f32 %v641_v34, %v3334_v24  ;;  %v787_v21 = vmax.f32 %v786_v40, %v3432_v53  ;;  %v790_v10 = vmax.f32 %v3437_v62, %v3448_v20 }
 0x1a6   : > { %v754_v39 = vpop.f32.mrf.mxu1  ;;  %v643_v5 = vpop.f32.mrf.mxu0 }
 0x1a7   : > { %5219 = vst [vmem:[#allocation34_spill] sm:$0xff] %v3452_v22  ;;  %5220 = vst [vmem:[#allocation35_spill] sm:$0xff] %v3457_v54  ;;  %v3461_v60 = vadd.f32 %v754_v39, %v3336_v25  ;;  %v3468_v12 = vadd.f32 %v643_v5, %v3338_v26  ;;  %788 = vmax.xlane.f32.xlu0 %v787_v21  ;;  %v791_v52 = vmax.f32 %v790_v10, %v3441_v4 }
 0x1a8   : > { %v756_v11 = vpop.f32.mrf.mxu1  ;;  %v647_v39 = vpop.f32.mrf.mxu0 }
 0x1a9   : > { %5221 = vst [vmem:[#allocation36_spill] sm:$0xff] %v3461_v60  ;;  %5222 = vst [vmem:[#allocation37_spill] sm:$0xff] %v3468_v12  ;;  %v3472_v45 = vadd.f32 %v756_v11, %v3340_v28  ;;  %v3477_v46 = vadd.f32 %v647_v39, %v3334_v24  ;;  %v792_v34 = vmax.f32 %v791_v52, %v3452_v22 }
 0x1aa   : > { %v760_v59 = vpop.f32.mrf.mxu1  ;;  %v649_v3 = vpop.f32.mrf.mxu0  ;;  %v795_v21 = vmax.f32 %v3457_v54, %v3468_v12 }
 0x1ab   : > { %5223 = vst [vmem:[#allocation38_spill] sm:$0xff] %v3472_v45  ;;  %5224 = vst [vmem:[#allocation39_spill] sm:$0xff] %v3477_v46  ;;  %v3481_v5 = vadd.f32 %v760_v59, %v3336_v25  ;;  %v3488_v10 = vadd.f32 %v649_v3, %v3338_v26  ;;  %793 = vmax.xlane.f32.xlu1 %v792_v34 }
 0x1ac   : > { %v762_v11 = vpop.f32.mrf.mxu1  ;;  %v796_v25 = vmax.f32 %v795_v21, %v3461_v60 }
 0x1ad   : > { %5225 = vst [vmem:[#allocation40_spill] sm:$0xff] %v3481_v5  ;;  %5226 = vst [vmem:[#allocation41_spill] sm:$0xff] %v3488_v10  ;;  %v3492_v39 = vadd.f32 %v762_v11, %v3340_v28  ;;  %v800_v13 = vmax.f32 %v3477_v46, %v3488_v10 }
 0x1ae   : > { %v797_v61 = vmax.f32 %v796_v25, %v3472_v45 }
 0x1af   : > { %5227 = vst [vmem:[#allocation42_spill] sm:$0xff] %v3492_v39  ;;  %v801_v26 = vmax.f32 %v800_v13, %v3481_v5 }
 0x1b0   : > { %798 = vmax.xlane.f32.xlu0 %v797_v61 }
 0x1b1   : > { %v802_v3 = vmax.f32 %v801_v26, %v3492_v39 }
 0x1b3   : > { %803 = vmax.xlane.f32.xlu1 %v802_v3 }
 0x220   : > { %v769_v28 = vpop.xlane.xlu0 %768 }
 0x221   : > { %vm805_vm0 = vcmp.ge.f32.partialorder %v3343_v31, %v769_v28  ;;  %vm806_vm1 = vcmp.ge.f32.partialorder %v3350_v36, %v769_v28  ;;  %vm807_vm2 = vcmp.ge.f32.partialorder %v3346_v32, %v769_v28  ;;  %vm808_vm3 = vcmp.ge.f32.partialorder %v3354_v38, %v769_v28 }
 0x222   : > { %v3506_v34 = vsel %vm805_vm0, -inf, %v3343_v31  ;;  %v3509_v11 = vsel %vm806_vm1, -inf, %v3350_v36  ;;  %v3515_v21 = vsel %vm807_vm2, -inf, %v3346_v32  ;;  %v3528_v28 = vsel %vm808_vm3, -inf, %v3354_v38 }
 0x223   : > { %v869_v61 = vmax.f32 %v3506_v34, %v3509_v11 }
 0x224   : > { %v774_v13 = vpop.xlane.xlu0 %773 }
 0x225   : > { %vm809_vm4 = vcmp.ge.f32.partialorder %v3358_v42, %v774_v13  ;;  %vm810_vm5 = vcmp.ge.f32.partialorder %v3368_v49, %v774_v13  ;;  %vm811_vm6 = vcmp.ge.f32.partialorder %v3362_v44, %v774_v13  ;;  %v870_v25 = vmax.f32 %v869_v61, %v3515_v21 }
 0x226   : > { %v3522_v26 = vsel %vm809_vm4, -inf, %v3358_v42  ;;  %v3525_v3 = vsel %vm810_vm5, -inf, %v3368_v49  ;;  %vm812_vm7 = vcmp.ge.f32.partialorder %v3372_v51, %v774_v13  ;;  %v3535_v40 = vsel %vm811_vm6, -inf, %v3362_v44 }
 0x227   : > { %v871_v24 = vmax.f32 %v870_v25, %v3528_v28  ;;  %v874_v52 = vmax.f32 %v3522_v26, %v3525_v3  ;;  %v3548_v16 = vsel %vm812_vm7, -inf, %v3372_v51 }
 0x228   : > { %v779_v59 = vpop.xlane.xlu1 %778 }
 0x229   : > { %vm813_vm8 = vcmp.ge.f32.partialorder %v3377_v56, %v779_v59  ;;  %vm814_vm9 = vcmp.ge.f32.partialorder %v3388_v0, %v779_v59  ;;  %vm815_vm10 = vcmp.ge.f32.partialorder %v3381_v58, %v779_v59  ;;  %872 = vmax.xlane.f32.xlu0 %v871_v24  ;;  %v875_v61 = vmax.f32 %v874_v52, %v3535_v40 }
 0x22a   : > { %v3542_v25 = vsel %vm813_vm8, -inf, %v3377_v56  ;;  %v3545_v13 = vsel %vm814_vm9, -inf, %v3388_v0  ;;  %vm816_vm11 = vcmp.ge.f32.partialorder %v3392_v2, %v779_v59  ;;  %v3555_v24 = vsel %vm815_vm10, -inf, %v3381_v58 }
 0x22b   : > { %v876_v14 = vmax.f32 %v875_v61, %v3548_v16  ;;  %v879_v30 = vmax.f32 %v3542_v25, %v3545_v13  ;;  %v3568_v1 = vsel %vm816_vm11, -inf, %v3392_v2 }
 0x22c   : > { %v784_v23 = vpop.xlane.xlu1 %783 }
 0x22d   : > { %vm817_vm12 = vcmp.ge.f32.partialorder %v3397_v7, %v784_v23  ;;  %vm818_vm13 = vcmp.ge.f32.partialorder %v3408_v15, %v784_v23  ;;  %vm819_vm14 = vcmp.ge.f32.partialorder %v3401_v9, %v784_v23  ;;  %877 = vmax.xlane.f32.xlu1 %v876_v14  ;;  %v880_v52 = vmax.f32 %v879_v30, %v3555_v24 }
 0x22e   : > { %v3562_v61 = vsel %vm817_vm12, -inf, %v3397_v7  ;;  %v3565_v59 = vsel %vm818_vm13, -inf, %v3408_v15  ;;  %vm820_vm15 = vcmp.ge.f32.partialorder %v3412_v19, %v784_v23  ;;  %v3575_v14 = vsel %vm819_vm14, -inf, %v3401_v9 }
 0x22f   : > { %v881_v63 = vmax.f32 %v880_v52, %v3568_v1  ;;  %v884_v8 = vmax.f32 %v3562_v61, %v3565_v59  ;;  %v3588_v50 = vsel %vm820_vm15, -inf, %v3412_v19 }
 0x230   : > { %v789_v6 = vpop.xlane.xlu0 %788 }
 0x231   : > { %vm821_vm0 = vcmp.ge.f32.partialorder %v3417_v29, %v789_v6  ;;  %vm822_vm1 = vcmp.ge.f32.partialorder %v3428_v47, %v789_v6  ;;  %vm823_vm2 = vcmp.ge.f32.partialorder %v3421_v33, %v789_v6  ;;  %882 = vmax.xlane.f32.xlu0 %v881_v63  ;;  %v885_v30 = vmax.f32 %v884_v8, %v3575_v14 }
 0x232   : > { %v3582_v52 = vsel %vm821_vm0, -inf, %v3417_v29  ;;  %v3585_v23 = vsel %vm822_vm1, -inf, %v3428_v47  ;;  %vm824_vm3 = vcmp.ge.f32.partialorder %v3432_v53, %v789_v6  ;;  %v3595_v63 = vsel %vm823_vm2, -inf, %v3421_v33 }
 0x233   : > { %v886_v48 = vmax.f32 %v885_v30, %v3588_v50  ;;  %v889_v57 = vmax.f32 %v3582_v52, %v3585_v23  ;;  %v3608_v37 = vsel %vm824_vm3, -inf, %v3432_v53 }
 0x234   : > { %v794_v55 = vpop.xlane.xlu1 %793 }
 0x235   : > { %vm825_vm4 = vcmp.ge.f32.partialorder %v3437_v62, %v794_v55  ;;  %vm826_vm5 = vcmp.ge.f32.partialorder %v3448_v20, %v794_v55  ;;  %vm827_vm6 = vcmp.ge.f32.partialorder %v3441_v4, %v794_v55  ;;  %887 = vmax.xlane.f32.xlu1 %v886_v48  ;;  %v890_v8 = vmax.f32 %v889_v57, %v3595_v63 }
 0x236   : > { %v3602_v30 = vsel %vm825_vm4, -inf, %v3437_v62  ;;  %v3605_v6 = vsel %vm826_vm5, -inf, %v3448_v20  ;;  %vm828_vm7 = vcmp.ge.f32.partialorder %v3452_v22, %v794_v55  ;;  %v3615_v48 = vsel %vm827_vm6, -inf, %v3441_v4 }
 0x237   : > { %v891_v35 = vmax.f32 %v890_v8, %v3608_v37  ;;  %v894_v43 = vmax.f32 %v3602_v30, %v3605_v6  ;;  %v3628_v17 = vsel %vm828_vm7, -inf, %v3452_v22 }
 0x239   : > { %v799_v41 = vpop.xlane.xlu0 %798  ;;  %892 = vmax.xlane.f32.xlu0 %v891_v35  ;;  %v895_v57 = vmax.f32 %v894_v43, %v3615_v48 }
 0x23a   : > { %vm829_vm8 = vcmp.ge.f32.partialorder %v3457_v54, %v799_v41  ;;  %vm830_vm9 = vcmp.ge.f32.partialorder %v3468_v12, %v799_v41  ;;  %vm831_vm10 = vcmp.ge.f32.partialorder %v3461_v60, %v799_v41  ;;  %vm832_vm11 = vcmp.ge.f32.partialorder %v3472_v45, %v799_v41 }
 0x23b   : > { %v3622_v8 = vsel %vm829_vm8, -inf, %v3457_v54  ;;  %v3625_v55 = vsel %vm830_vm9, -inf, %v3468_v12  ;;  %v896_v18 = vmax.f32 %v895_v57, %v3628_v17  ;;  %v3638_v35 = vsel %vm831_vm10, -inf, %v3461_v60 }
 0x23c   : > { %v804_v27 = vpop.xlane.xlu1 %803  ;;  %v899_v4 = vmax.f32 %v3622_v8, %v3625_v55  ;;  %v3648_v57 = vsel %vm832_vm11, -inf, %v3472_v45 }
 0x23d   : > { %vm833_vm12 = vcmp.ge.f32.partialorder %v3477_v46, %v804_v27  ;;  %vm834_vm13 = vcmp.ge.f32.partialorder %v3488_v10, %v804_v27  ;;  %vm835_vm14 = vcmp.ge.f32.partialorder %v3481_v5, %v804_v27  ;;  %897 = vmax.xlane.f32.xlu1 %v896_v18  ;;  %vm836_vm15 = vcmp.ge.f32.partialorder %v3492_v39, %v804_v27 }
 0x23e   : > { %v3641_v43 = vsel %vm833_vm12, -inf, %v3477_v46  ;;  %v3644_v12 = vsel %vm834_vm13, -inf, %v3488_v10  ;;  %v900_v41 = vmax.f32 %v899_v4, %v3638_v35  ;;  %v3655_v22 = vsel %vm835_vm14, -inf, %v3481_v5 }
 0x23f   : > { %v904_v54 = vmax.f32 %v3641_v43, %v3644_v12  ;;  %v3659_v18 = vsel %vm836_vm15, -inf, %v3492_v39 }
 0x240   : > { %v901_v60 = vmax.f32 %v900_v41, %v3648_v57 }
 0x241   : > { %v905_v46 = vmax.f32 %v904_v54, %v3655_v22 }
 0x242   : > { %902 = vmax.xlane.f32.xlu0 %v901_v60 }
 0x243   : > { %v906_v4 = vmax.f32 %v905_v46, %v3659_v18 }
 0x245   : > { %907 = vmax.xlane.f32.xlu1 %v906_v4 }
 0x2b2   : > { %v873_v10 = vpop.xlane.xlu0 %872 }
 0x2b3   : > { %vm909_vm0 = vcmp.ge.f32.partialorder %v3506_v34, %v873_v10  ;;  %vm910_vm1 = vcmp.ge.f32.partialorder %v3509_v11, %v873_v10  ;;  %vm911_vm2 = vcmp.ge.f32.partialorder %v3515_v21, %v873_v10  ;;  %vm912_vm3 = vcmp.ge.f32.partialorder %v3528_v28, %v873_v10 }
 0x2b4   : > { %v3666_v27 = vsel %vm909_vm0, -inf, %v3506_v34  ;;  %v3669_v41 = vsel %vm910_vm1, -inf, %v3509_v11  ;;  %v3675_v60 = vsel %vm911_vm2, -inf, %v3515_v21  ;;  %v3688_v4 = vsel %vm912_vm3, -inf, %v3528_v28 }
 0x2b5   : > { %v973_v54 = vmax.f32 %v3666_v27, %v3669_v41 }
 0x2b6   : > { %v878_v46 = vpop.xlane.xlu1 %877 }
 0x2b7   : > { %vm913_vm4 = vcmp.ge.f32.partialorder %v3522_v26, %v878_v46  ;;  %vm914_vm5 = vcmp.ge.f32.partialorder %v3525_v3, %v878_v46  ;;  %vm915_vm6 = vcmp.ge.f32.partialorder %v3535_v40, %v878_v46  ;;  %v974_v34 = vmax.f32 %v973_v54, %v3675_v60 }
 0x2b8   : > { %v3682_v11 = vsel %vm913_vm4, -inf, %v3522_v26  ;;  %v3685_v10 = vsel %vm914_vm5, -inf, %v3525_v3  ;;  %vm916_vm7 = vcmp.ge.f32.partialorder %v3548_v16, %v878_v46  ;;  %v3695_v45 = vsel %vm915_vm6, -inf, %v3535_v40 }
 0x2b9   : > { %v975_v21 = vmax.f32 %v974_v34, %v3688_v4  ;;  %v978_v39 = vmax.f32 %v3682_v11, %v3685_v10  ;;  %v3708_v54 = vsel %vm916_vm7, -inf, %v3548_v16 }
 0x2ba   : > { %v883_v5 = vpop.xlane.xlu0 %882 }
 0x2bb   : > { %vm917_vm8 = vcmp.ge.f32.partialorder %v3542_v25, %v883_v5  ;;  %vm918_vm9 = vcmp.ge.f32.partialorder %v3545_v13, %v883_v5  ;;  %vm919_vm10 = vcmp.ge.f32.partialorder %v3555_v24, %v883_v5  ;;  %976 = vmax.xlane.f32.xlu0 %v975_v21  ;;  %v979_v26 = vmax.f32 %v978_v39, %v3695_v45 }
 0x2bc   : > { %v3702_v3 = vsel %vm917_vm8, -inf, %v3542_v25  ;;  %v3705_v28 = vsel %vm918_vm9, -inf, %v3545_v13  ;;  %vm920_vm11 = vcmp.ge.f32.partialorder %v3568_v1, %v883_v5  ;;  %v3715_v21 = vsel %vm919_vm10, -inf, %v3555_v24 }
 0x2bd   : > { %v980_v40 = vmax.f32 %v979_v26, %v3708_v54  ;;  %v983_v46 = vmax.f32 %v3702_v3, %v3705_v28  ;;  %v3728_v25 = vsel %vm920_vm11, -inf, %v3568_v1 }
 0x2be   : > { %v888_v34 = vpop.xlane.xlu1 %887 }
 0x2bf   : > { %vm921_vm12 = vcmp.ge.f32.partialorder %v3562_v61, %v888_v34  ;;  %vm922_vm13 = vcmp.ge.f32.partialorder %v3565_v59, %v888_v34  ;;  %vm923_vm14 = vcmp.ge.f32.partialorder %v3575_v14, %v888_v34  ;;  %981 = vmax.xlane.f32.xlu1 %v980_v40  ;;  %v984_v16 = vmax.f32 %v983_v46, %v3715_v21 }
 0x2c0   : > { %v3722_v39 = vsel %vm921_vm12, -inf, %v3562_v61  ;;  %v3725_v5 = vsel %vm922_vm13, -inf, %v3565_v59  ;;  %vm924_vm15 = vcmp.ge.f32.partialorder %v3588_v50, %v888_v34  ;;  %v3735_v40 = vsel %vm923_vm14, -inf, %v3575_v14 }
 0x2c1   : > { %v985_v13 = vmax.f32 %v984_v16, %v3728_v25  ;;  %v988_v24 = vmax.f32 %v3722_v39, %v3725_v5  ;;  %v3748_v46 = vsel %vm924_vm15, -inf, %v3588_v50 }
 0x2c2   : > { %v893_v26 = vpop.xlane.xlu0 %892 }
 0x2c3   : > { %vm925_vm0 = vcmp.ge.f32.partialorder %v3582_v52, %v893_v26  ;;  %vm926_vm1 = vcmp.ge.f32.partialorder %v3585_v23, %v893_v26  ;;  %vm927_vm2 = vcmp.ge.f32.partialorder %v3595_v63, %v893_v26  ;;  %986 = vmax.xlane.f32.xlu0 %v985_v13  ;;  %v989_v1 = vmax.f32 %v988_v24, %v3735_v40 }
 0x2c4   : > { %v3742_v61 = vsel %vm925_vm0, -inf, %v3582_v52  ;;  %v3745_v59 = vsel %vm926_vm1, -inf, %v3585_v23  ;;  %vm928_vm3 = vcmp.ge.f32.partialorder %v3608_v37, %v893_v26  ;;  %v3755_v13 = vsel %vm927_vm2, -inf, %v3595_v63 }
 0x2c5   : > { %v990_v14 = vmax.f32 %v989_v1, %v3748_v46  ;;  %v993_v34 = vmax.f32 %v3742_v61, %v3745_v59  ;;  %v3768_v24 = vsel %vm928_vm3, -inf, %v3608_v37 }
 0x2c6   : > { %v898_v16 = vpop.xlane.xlu1 %897 }
 0x2c7   : > { %vm929_vm4 = vcmp.ge.f32.partialorder %v3602_v30, %v898_v16  ;;  %vm930_vm5 = vcmp.ge.f32.partialorder %v3605_v6, %v898_v16  ;;  %vm931_vm6 = vcmp.ge.f32.partialorder %v3615_v48, %v898_v16  ;;  %991 = vmax.xlane.f32.xlu1 %v990_v14  ;;  %v994_v50 = vmax.f32 %v993_v34, %v3755_v13 }
 0x2c8   : > { %v3762_v52 = vsel %vm929_vm4, -inf, %v3602_v30  ;;  %v3765_v23 = vsel %vm930_vm5, -inf, %v3605_v6  ;;  %vm932_vm7 = vcmp.ge.f32.partialorder %v3628_v17, %v898_v16  ;;  %v3775_v14 = vsel %vm931_vm6, -inf, %v3615_v48 }
 0x2c9   : > { %v995_v63 = vmax.f32 %v994_v50, %v3768_v24  ;;  %v998_v26 = vmax.f32 %v3762_v52, %v3765_v23  ;;  %v3788_v34 = vsel %vm932_vm7, -inf, %v3628_v17 }
 0x2cb   : > { %v903_v1 = vpop.xlane.xlu0 %902  ;;  %996 = vmax.xlane.f32.xlu0 %v995_v63  ;;  %v999_v37 = vmax.f32 %v998_v26, %v3775_v14 }
 0x2cc   : > { %vm933_vm8 = vcmp.ge.f32.partialorder %v3622_v8, %v903_v1  ;;  %vm934_vm9 = vcmp.ge.f32.partialorder %v3625_v55, %v903_v1  ;;  %vm935_vm10 = vcmp.ge.f32.partialorder %v3638_v35, %v903_v1  ;;  %vm936_vm11 = vcmp.ge.f32.partialorder %v3648_v57, %v903_v1 }
 0x2cd   : > { %v3782_v30 = vsel %vm933_vm8, -inf, %v3622_v8  ;;  %v3785_v6 = vsel %vm934_vm9, -inf, %v3625_v55  ;;  %v1000_v16 = vmax.f32 %v999_v37, %v3788_v34  ;;  %v3798_v8 = vsel %vm935_vm10, -inf, %v3638_v35 }
 0x2ce   : > { %v908_v48 = vpop.xlane.xlu1 %907  ;;  %v1003_v50 = vmax.f32 %v3782_v30, %v3785_v6  ;;  %v3808_v26 = vsel %vm936_vm11, -inf, %v3648_v57 }
 0x2cf   : > { %vm937_vm12 = vcmp.ge.f32.partialorder %v3641_v43, %v908_v48  ;;  %vm938_vm13 = vcmp.ge.f32.partialorder %v3644_v12, %v908_v48  ;;  %vm939_vm14 = vcmp.ge.f32.partialorder %v3655_v22, %v908_v48  ;;  %1001 = vmax.xlane.f32.xlu1 %v1000_v16  ;;  %vm940_vm15 = vcmp.ge.f32.partialorder %v3659_v18, %v908_v48 }
 0x2d0   : > { %v3801_v17 = vsel %vm937_vm12, -inf, %v3641_v43  ;;  %v3804_v55 = vsel %vm938_vm13, -inf, %v3644_v12  ;;  %v1004_v63 = vmax.f32 %v1003_v50, %v3798_v8  ;;  %v3815_v37 = vsel %vm939_vm14, -inf, %v3655_v22 }
 0x2d1   : > { %v1008_v1 = vmax.f32 %v3801_v17, %v3804_v55  ;;  %v3819_v12 = vsel %vm940_vm15, -inf, %v3659_v18 }
 0x2d2   : > { %v1005_v35 = vmax.f32 %v1004_v63, %v3808_v26 }
 0x2d3   : > { %v1009_v43 = vmax.f32 %v1008_v1, %v3815_v37 }
 0x2d4   : > { %1006 = vmax.xlane.f32.xlu0 %v1005_v35 }
 0x2d5   : > { %v1010_v16 = vmax.f32 %v1009_v43, %v3819_v12 }
 0x2d7   : > { %1011 = vmax.xlane.f32.xlu1 %v1010_v16 }
 0x344   : > { %v977_v57 = vpop.xlane.xlu0 %976 }
 0x345   : > { %vm1013_vm0 = vcmp.ge.f32.partialorder %v3666_v27, %v977_v57  ;;  %vm1014_vm1 = vcmp.ge.f32.partialorder %v3669_v41, %v977_v57  ;;  %vm1015_vm2 = vcmp.ge.f32.partialorder %v3675_v60, %v977_v57  ;;  %vm1016_vm3 = vcmp.ge.f32.partialorder %v3688_v4, %v977_v57 }
 0x346   : > { %v3826_v48 = vsel %vm1013_vm0, -inf, %v3666_v27  ;;  %v3829_v22 = vsel %vm1014_vm1, -inf, %v3669_v41  ;;  %v3835_v63 = vsel %vm1015_vm2, -inf, %v3675_v60  ;;  %v3848_v35 = vsel %vm1016_vm3, -inf, %v3688_v4 }
 0x347   : > { %v1077_v18 = vmax.f32 %v3826_v48, %v3829_v22 }
 0x348   : > { %v982_v50 = vpop.xlane.xlu1 %981 }
 0x349   : > { %vm1017_vm4 = vcmp.ge.f32.partialorder %v3682_v11, %v982_v50  ;;  %vm1018_vm5 = vcmp.ge.f32.partialorder %v3685_v10, %v982_v50  ;;  %vm1019_vm6 = vcmp.ge.f32.partialorder %v3695_v45, %v982_v50  ;;  %v1078_v27 = vmax.f32 %v1077_v18, %v3835_v63 }
 0x34a   : > { %v3842_v41 = vsel %vm1017_vm4, -inf, %v3682_v11  ;;  %v3845_v1 = vsel %vm1018_vm5, -inf, %v3685_v10  ;;  %vm1020_vm7 = vcmp.ge.f32.partialorder %v3708_v54, %v982_v50  ;;  %v3855_v57 = vsel %vm1019_vm6, -inf, %v3695_v45 }
 0x34b   : > { %v1079_v60 = vmax.f32 %v1078_v27, %v3848_v35  ;;  %v1082_v43 = vmax.f32 %v3842_v41, %v3845_v1  ;;  %v3868_v18 = vsel %vm1020_vm7, -inf, %v3708_v54 }
 0x34c   : > { %v987_v16 = vpop.xlane.xlu0 %986 }
 0x34d   : > { %vm1021_vm8 = vcmp.ge.f32.partialorder %v3702_v3, %v987_v16  ;;  %vm1022_vm9 = vcmp.ge.f32.partialorder %v3705_v28, %v987_v16  ;;  %vm1023_vm10 = vcmp.ge.f32.partialorder %v3715_v21, %v987_v16  ;;  %1080 = vmax.xlane.f32.xlu0 %v1079_v60  ;;  %v1083_v11 = vmax.f32 %v1082_v43, %v3855_v57 }
 0x34e   : > { %v3862_v10 = vsel %vm1021_vm8, -inf, %v3702_v3  ;;  %v3865_v4 = vsel %vm1022_vm9, -inf, %v3705_v28  ;;  %vm1024_vm11 = vcmp.ge.f32.partialorder %v3728_v25, %v987_v16  ;;  %v3875_v60 = vsel %vm1023_vm10, -inf, %v3715_v21 }
 0x34f   : > { %v1084_v45 = vmax.f32 %v1083_v11, %v3868_v18  ;;  %v1087_v50 = vmax.f32 %v3862_v10, %v3865_v4  ;;  %v3888_v43 = vsel %vm1024_vm11, -inf, %v3728_v25 }
 0x350   : > { %v992_v27 = vpop.xlane.xlu1 %991 }
 0x351   : > { %vm1025_vm12 = vcmp.ge.f32.partialorder %v3722_v39, %v992_v27  ;;  %vm1026_vm13 = vcmp.ge.f32.partialorder %v3725_v5, %v992_v27  ;;  %vm1027_vm14 = vcmp.ge.f32.partialorder %v3735_v40, %v992_v27  ;;  %1085 = vmax.xlane.f32.xlu1 %v1084_v45  ;;  %v1088_v3 = vmax.f32 %v1087_v50, %v3875_v60 }
 0x352   : > { %v3882_v28 = vsel %vm1025_vm12, -inf, %v3722_v39  ;;  %v3885_v54 = vsel %vm1026_vm13, -inf, %v3725_v5  ;;  %vm1028_vm15 = vcmp.ge.f32.partialorder %v3748_v46, %v992_v27  ;;  %v3895_v45 = vsel %vm1027_vm14, -inf, %v3735_v40 }
 0x353   : > { %v1089_v21 = vmax.f32 %v1088_v3, %v3888_v43  ;;  %v1092_v16 = vmax.f32 %v3882_v28, %v3885_v54  ;;  %v3908_v50 = vsel %vm1028_vm15, -inf, %v3748_v46 }
 0x354   : > { %v997_v11 = vpop.xlane.xlu0 %996 }
 0x355   : > { %vm1029_vm0 = vcmp.ge.f32.partialorder %v3742_v61, %v997_v11  ;;  %vm1030_vm1 = vcmp.ge.f32.partialorder %v3745_v59, %v997_v11  ;;  %vm1031_vm2 = vcmp.ge.f32.partialorder %v3755_v13, %v997_v11  ;;  %1090 = vmax.xlane.f32.xlu0 %v1089_v21  ;;  %v1093_v39 = vmax.f32 %v1092_v16, %v3895_v45 }
 0x356   : > { %v3902_v5 = vsel %vm1029_vm0, -inf, %v3742_v61  ;;  %v3905_v25 = vsel %vm1030_vm1, -inf, %v3745_v59  ;;  %vm1032_vm3 = vcmp.ge.f32.partialorder %v3768_v24, %v997_v11  ;;  %v3915_v21 = vsel %vm1031_vm2, -inf, %v3755_v13 }
 0x357   : > { %v1094_v40 = vmax.f32 %v1093_v39, %v3908_v50  ;;  %v1097_v27 = vmax.f32 %v3902_v5, %v3905_v25  ;;  %v3928_v16 = vsel %vm1032_vm3, -inf, %v3768_v24 }
 0x358   : > { %v1002_v3 = vpop.xlane.xlu1 %1001 }
 0x359   : > { %vm1033_vm4 = vcmp.ge.f32.partialorder %v3762_v52, %v1002_v3  ;;  %vm1034_vm5 = vcmp.ge.f32.partialorder %v3765_v23, %v1002_v3  ;;  %vm1035_vm6 = vcmp.ge.f32.partialorder %v3775_v14, %v1002_v3  ;;  %1095 = vmax.xlane.f32.xlu1 %v1094_v40  ;;  %v1098_v61 = vmax.f32 %v1097_v27, %v3915_v21 }
 0x35a   : > { %v3922_v59 = vsel %vm1033_vm4, -inf, %v3762_v52  ;;  %v3925_v46 = vsel %vm1034_vm5, -inf, %v3765_v23  ;;  %vm1036_vm7 = vcmp.ge.f32.partialorder %v3788_v34, %v1002_v3  ;;  %v3935_v40 = vsel %vm1035_vm6, -inf, %v3775_v14 }
 0x35b   : > { %v1099_v13 = vmax.f32 %v1098_v61, %v3928_v16  ;;  %v1102_v11 = vmax.f32 %v3922_v59, %v3925_v46  ;;  %v3948_v27 = vsel %vm1036_vm7, -inf, %v3788_v34 }
 0x35d   : > { %v1007_v39 = vpop.xlane.xlu0 %1006  ;;  %1100 = vmax.xlane.f32.xlu0 %v1099_v13  ;;  %v1103_v52 = vmax.f32 %v1102_v11, %v3935_v40 }
 0x35e   : > { %vm1037_vm8 = vcmp.ge.f32.partialorder %v3782_v30, %v1007_v39  ;;  %vm1038_vm9 = vcmp.ge.f32.partialorder %v3785_v6, %v1007_v39  ;;  %vm1039_vm10 = vcmp.ge.f32.partialorder %v3798_v8, %v1007_v39  ;;  %vm1040_vm11 = vcmp.ge.f32.partialorder %v3808_v26, %v1007_v39 }
 0x35f   : > { %v3942_v23 = vsel %vm1037_vm8, -inf, %v3782_v30  ;;  %v3945_v24 = vsel %vm1038_vm9, -inf, %v3785_v6  ;;  %v1104_v3 = vmax.f32 %v1103_v52, %v3948_v27  ;;  %v3958_v30 = vsel %vm1039_vm10, -inf, %v3798_v8 }
 0x360   : > { %v1012_v14 = vpop.xlane.xlu1 %1011  ;;  %v1107_v61 = vmax.f32 %v3942_v23, %v3945_v24  ;;  %v3968_v11 = vsel %vm1040_vm11, -inf, %v3808_v26 }
 0x361   : > { %vm1041_vm12 = vcmp.ge.f32.partialorder %v3801_v17, %v1012_v14  ;;  %vm1042_vm13 = vcmp.ge.f32.partialorder %v3804_v55, %v1012_v14  ;;  %vm1043_vm14 = vcmp.ge.f32.partialorder %v3815_v37, %v1012_v14  ;;  %1105 = vmax.xlane.f32.xlu1 %v1104_v3  ;;  %vm1044_vm15 = vcmp.ge.f32.partialorder %v3819_v12, %v1012_v14 }
 0x362   : > { %v3961_v6 = vsel %vm1041_vm12, -inf, %v3801_v17  ;;  %v3964_v34 = vsel %vm1042_vm13, -inf, %v3804_v55  ;;  %v1108_v13 = vmax.f32 %v1107_v61, %v3958_v30  ;;  %v3975_v52 = vsel %vm1043_vm14, -inf, %v3815_v37 }
 0x363   : > { %v1112_v39 = vmax.f32 %v3961_v6, %v3964_v34  ;;  %v3979_v55 = vsel %vm1044_vm15, -inf, %v3819_v12 }
 0x364   : > { %v1109_v8 = vmax.f32 %v1108_v13, %v3968_v11 }
 0x365   : > { %v1113_v17 = vmax.f32 %v1112_v39, %v3975_v52 }
 0x366   : > { %1110 = vmax.xlane.f32.xlu0 %v1109_v8 }
 0x367   : > { %v1114_v3 = vmax.f32 %v1113_v17, %v3979_v55 }
 0x369   : > { %1115 = vmax.xlane.f32.xlu1 %v1114_v3 }
 0x3d6   : > { %v1081_v26 = vpop.xlane.xlu0 %1080 }
 0x3d7   : > { %vm1117_vm0 = vcmp.ge.f32.partialorder %v3826_v48, %v1081_v26  ;;  %vm1118_vm1 = vcmp.ge.f32.partialorder %v3829_v22, %v1081_v26  ;;  %vm1119_vm2 = vcmp.ge.f32.partialorder %v3835_v63, %v1081_v26  ;;  %vm1120_vm3 = vcmp.ge.f32.partialorder %v3848_v35, %v1081_v26 }
 0x3d8   : > { %v3986_v14 = vsel %vm1117_vm0, -inf, %v3826_v48  ;;  %v3989_v37 = vsel %vm1118_vm1, -inf, %v3829_v22  ;;  %v3995_v13 = vsel %vm1119_vm2, -inf, %v3835_v63  ;;  %v4008_v8 = vsel %vm1120_vm3, -inf, %v3848_v35 }
 0x3d9   : > { %v1181_v12 = vmax.f32 %v3986_v14, %v3989_v37 }
 0x3da   : > { %v1086_v61 = vpop.xlane.xlu1 %1085 }
 0x3db   : > { %vm1121_vm4 = vcmp.ge.f32.partialorder %v3842_v41, %v1086_v61  ;;  %vm1122_vm5 = vcmp.ge.f32.partialorder %v3845_v1, %v1086_v61  ;;  %vm1123_vm6 = vcmp.ge.f32.partialorder %v3855_v57, %v1086_v61  ;;  %v1182_v48 = vmax.f32 %v1181_v12, %v3995_v13 }
 0x3dc   : > { %v4002_v22 = vsel %vm1121_vm4, -inf, %v3842_v41  ;;  %v4005_v39 = vsel %vm1122_vm5, -inf, %v3845_v1  ;;  %vm1124_vm7 = vcmp.ge.f32.partialorder %v3868_v18, %v1086_v61  ;;  %v4015_v26 = vsel %vm1123_vm6, -inf, %v3855_v57 }
 0x3dd   : > { %v1183_v63 = vmax.f32 %v1182_v48, %v4008_v8  ;;  %v1186_v17 = vmax.f32 %v4002_v22, %v4005_v39  ;;  %v4028_v12 = vsel %vm1124_vm7, -inf, %v3868_v18 }
 0x3de   : > { %v1091_v3 = vpop.xlane.xlu0 %1090 }
 0x3df   : > { %vm1125_vm8 = vcmp.ge.f32.partialorder %v3862_v10, %v1091_v3  ;;  %vm1126_vm9 = vcmp.ge.f32.partialorder %v3865_v4, %v1091_v3  ;;  %vm1127_vm10 = vcmp.ge.f32.partialorder %v3875_v60, %v1091_v3  ;;  %1184 = vmax.xlane.f32.xlu0 %v1183_v63  ;;  %v1187_v41 = vmax.f32 %v1186_v17, %v4015_v26 }
 0x3e0   : > { %v4022_v1 = vsel %vm1125_vm8, -inf, %v3862_v10  ;;  %v4025_v35 = vsel %vm1126_vm9, -inf, %v3865_v4  ;;  %vm1128_vm11 = vcmp.ge.f32.partialorder %v3888_v43, %v1091_v3  ;;  %v4035_v63 = vsel %vm1127_vm10, -inf, %v3875_v60 }
 0x3e1   : > { %v1188_v57 = vmax.f32 %v1187_v41, %v4028_v12  ;;  %v1191_v61 = vmax.f32 %v4022_v1, %v4025_v35  ;;  %v4048_v17 = vsel %vm1128_vm11, -inf, %v3888_v43 }
 0x3e2   : > { %v1096_v48 = vpop.xlane.xlu1 %1095 }
 0x3e3   : > { %vm1129_vm12 = vcmp.ge.f32.partialorder %v3882_v28, %v1096_v48  ;;  %vm1130_vm13 = vcmp.ge.f32.partialorder %v3885_v54, %v1096_v48  ;;  %vm1131_vm14 = vcmp.ge.f32.partialorder %v3895_v45, %v1096_v48  ;;  %1189 = vmax.xlane.f32.xlu1 %v1188_v57  ;;  %v1192_v10 = vmax.f32 %v1191_v61, %v4035_v63 }
 0x3e4   : > { %v4042_v4 = vsel %vm1129_vm12, -inf, %v3882_v28  ;;  %v4045_v18 = vsel %vm1130_vm13, -inf, %v3885_v54  ;;  %vm1132_vm15 = vcmp.ge.f32.partialorder %v3908_v50, %v1096_v48  ;;  %v4055_v57 = vsel %vm1131_vm14, -inf, %v3895_v45 }
 0x3e5   : > { %v1193_v60 = vmax.f32 %v1192_v10, %v4048_v17  ;;  %v1196_v3 = vmax.f32 %v4042_v4, %v4045_v18  ;;  %v4068_v61 = vsel %vm1132_vm15, -inf, %v3908_v50 }
 0x3e6   : > { %v1101_v41 = vpop.xlane.xlu0 %1100 }
 0x3e7   : > { %vm1133_vm0 = vcmp.ge.f32.partialorder %v3902_v5, %v1101_v41  ;;  %vm1134_vm1 = vcmp.ge.f32.partialorder %v3905_v25, %v1101_v41  ;;  %vm1135_vm2 = vcmp.ge.f32.partialorder %v3915_v21, %v1101_v41  ;;  %1194 = vmax.xlane.f32.xlu0 %v1193_v60  ;;  %v1197_v28 = vmax.f32 %v1196_v3, %v4055_v57 }
 0x3e8   : > { %v4062_v54 = vsel %vm1133_vm0, -inf, %v3902_v5  ;;  %v4065_v43 = vsel %vm1134_vm1, -inf, %v3905_v25  ;;  %vm1136_vm3 = vcmp.ge.f32.partialorder %v3928_v16, %v1101_v41  ;;  %v4075_v60 = vsel %vm1135_vm2, -inf, %v3915_v21 }
 0x3e9   : > { %v1198_v45 = vmax.f32 %v1197_v28, %v4068_v61  ;;  %v1201_v48 = vmax.f32 %v4062_v54, %v4065_v43  ;;  %v4088_v3 = vsel %vm1136_vm3, -inf, %v3928_v16 }
 0x3ea   : > { %v1106_v10 = vpop.xlane.xlu1 %1105 }
 0x3eb   : > { %vm1137_vm4 = vcmp.ge.f32.partialorder %v3922_v59, %v1106_v10  ;;  %vm1138_vm5 = vcmp.ge.f32.partialorder %v3925_v46, %v1106_v10  ;;  %vm1139_vm6 = vcmp.ge.f32.partialorder %v3935_v40, %v1106_v10  ;;  %1199 = vmax.xlane.f32.xlu1 %v1198_v45  ;;  %v1202_v5 = vmax.f32 %v1201_v48, %v4075_v60 }
 0x3ec   : > { %v4082_v25 = vsel %vm1137_vm4, -inf, %v3922_v59  ;;  %v4085_v50 = vsel %vm1138_vm5, -inf, %v3925_v46  ;;  %vm1140_vm7 = vcmp.ge.f32.partialorder %v3948_v27, %v1106_v10  ;;  %v4095_v45 = vsel %vm1139_vm6, -inf, %v3935_v40 }
 0x3ed   : > { %v1203_v21 = vmax.f32 %v1202_v5, %v4088_v3  ;;  %v1206_v41 = vmax.f32 %v4082_v25, %v4085_v50  ;;  %v4108_v48 = vsel %vm1140_vm7, -inf, %v3948_v27 }
 0x3ef   : > { %v1111_v28 = vpop.xlane.xlu0 %1110  ;;  %1204 = vmax.xlane.f32.xlu0 %v1203_v21  ;;  %v1207_v59 = vmax.f32 %v1206_v41, %v4095_v45 }
 0x3f0   : > { %vm1141_vm8 = vcmp.ge.f32.partialorder %v3942_v23, %v1111_v28  ;;  %vm1142_vm9 = vcmp.ge.f32.partialorder %v3945_v24, %v1111_v28  ;;  %vm1143_vm10 = vcmp.ge.f32.partialorder %v3958_v30, %v1111_v28  ;;  %vm1144_vm11 = vcmp.ge.f32.partialorder %v3968_v11, %v1111_v28 }
 0x3f1   : > { %v4102_v46 = vsel %vm1141_vm8, -inf, %v3942_v23  ;;  %v4105_v16 = vsel %vm1142_vm9, -inf, %v3945_v24  ;;  %v1208_v10 = vmax.f32 %v1207_v59, %v4108_v48  ;;  %v4118_v23 = vsel %vm1143_vm10, -inf, %v3958_v30 }
 0x3f2   : > { %v1116_v40 = vpop.xlane.xlu1 %1115  ;;  %v1211_v5 = vmax.f32 %v4102_v46, %v4105_v16  ;;  %v4128_v41 = vsel %vm1144_vm11, -inf, %v3968_v11 }
 0x3f3   : > { %vm1145_vm12 = vcmp.ge.f32.partialorder %v3961_v6, %v1116_v40  ;;  %vm1146_vm13 = vcmp.ge.f32.partialorder %v3964_v34, %v1116_v40  ;;  %vm1147_vm14 = vcmp.ge.f32.partialorder %v3975_v52, %v1116_v40  ;;  %1209 = vmax.xlane.f32.xlu1 %v1208_v10  ;;  %vm1148_vm15 = vcmp.ge.f32.partialorder %v3979_v55, %v1116_v40 }
 0x3f4   : > { %v4121_v24 = vsel %vm1145_vm12, -inf, %v3961_v6  ;;  %v4124_v27 = vsel %vm1146_vm13, -inf, %v3964_v34  ;;  %v1212_v21 = vmax.f32 %v1211_v5, %v4118_v23  ;;  %v4135_v59 = vsel %vm1147_vm14, -inf, %v3975_v52 }
 0x3f5   : > { %v1216_v28 = vmax.f32 %v4121_v24, %v4124_v27  ;;  %v4139_v34 = vsel %vm1148_vm15, -inf, %v3979_v55 }
 0x3f6   : > { %v1213_v30 = vmax.f32 %v1212_v21, %v4128_v41 }
 0x3f7   : > { %v1217_v6 = vmax.f32 %v1216_v28, %v4135_v59 }
 0x3f8   : > { %1214 = vmax.xlane.f32.xlu0 %v1213_v30 }
 0x3f9   : > { %v1218_v10 = vmax.f32 %v1217_v6, %v4139_v34 }
 0x3fb   : > { %1219 = vmax.xlane.f32.xlu1 %v1218_v10 }
 0x468   : > { %v1185_v11 = vpop.xlane.xlu0 %1184 }
 0x469   : > { %vm1221_vm0 = vcmp.ge.f32.partialorder %v3986_v14, %v1185_v11  ;;  %vm1222_vm1 = vcmp.ge.f32.partialorder %v3989_v37, %v1185_v11  ;;  %vm1223_vm2 = vcmp.ge.f32.partialorder %v3995_v13, %v1185_v11  ;;  %vm1224_vm3 = vcmp.ge.f32.partialorder %v4008_v8, %v1185_v11 }
 0x46a   : > { %v4146_v40 = vsel %vm1221_vm0, -inf, %v3986_v14  ;;  %v4149_v52 = vsel %vm1222_vm1, -inf, %v3989_v37  ;;  %v4155_v21 = vsel %vm1223_vm2, -inf, %v3995_v13  ;;  %v4168_v30 = vsel %vm1224_vm3, -inf, %v4008_v8 }
 0x46b   : > { %v1285_v55 = vmax.f32 %v4146_v40, %v4149_v52 }
 0x46c   : > { %v1190_v5 = vpop.xlane.xlu1 %1189 }
 0x46d   : > { %vm1225_vm4 = vcmp.ge.f32.partialorder %v4002_v22, %v1190_v5  ;;  %vm1226_vm5 = vcmp.ge.f32.partialorder %v4005_v39, %v1190_v5  ;;  %vm1227_vm6 = vcmp.ge.f32.partialorder %v4015_v26, %v1190_v5  ;;  %v1286_v14 = vmax.f32 %v1285_v55, %v4155_v21 }
 0x46e   : > { %v4162_v37 = vsel %vm1225_vm4, -inf, %v4002_v22  ;;  %v4165_v28 = vsel %vm1226_vm5, -inf, %v4005_v39  ;;  %vm1228_vm7 = vcmp.ge.f32.partialorder %v4028_v12, %v1190_v5  ;;  %v4175_v11 = vsel %vm1227_vm6, -inf, %v4015_v26 }
 0x46f   : > { %v1287_v13 = vmax.f32 %v1286_v14, %v4168_v30  ;;  %v1290_v6 = vmax.f32 %v4162_v37, %v4165_v28  ;;  %v4188_v55 = vsel %vm1228_vm7, -inf, %v4028_v12 }
 0x470   : > { %v1195_v10 = vpop.xlane.xlu0 %1194 }
 0x471   : > { %vm1229_vm8 = vcmp.ge.f32.partialorder %v4022_v1, %v1195_v10  ;;  %vm1230_vm9 = vcmp.ge.f32.partialorder %v4025_v35, %v1195_v10  ;;  %vm1231_vm10 = vcmp.ge.f32.partialorder %v4035_v63, %v1195_v10  ;;  %1288 = vmax.xlane.f32.xlu0 %v1287_v13  ;;  %v1291_v22 = vmax.f32 %v1290_v6, %v4175_v11 }
 0x472   : > { %v4182_v39 = vsel %vm1229_vm8, -inf, %v4022_v1  ;;  %v4185_v8 = vsel %vm1230_vm9, -inf, %v4025_v35  ;;  %vm1232_vm11 = vcmp.ge.f32.partialorder %v4048_v17, %v1195_v10  ;;  %v4195_v13 = vsel %vm1231_vm10, -inf, %v4035_v63 }
 0x473   : > { %v1292_v26 = vmax.f32 %v1291_v22, %v4188_v55  ;;  %v1295_v5 = vmax.f32 %v4182_v39, %v4185_v8  ;;  %v4208_v6 = vsel %vm1232_vm11, -inf, %v4048_v17 }
 0x474   : > { %v1200_v14 = vpop.xlane.xlu1 %1199 }
 0x475   : > { %vm1233_vm12 = vcmp.ge.f32.partialorder %v4042_v4, %v1200_v14  ;;  %vm1234_vm13 = vcmp.ge.f32.partialorder %v4045_v18, %v1200_v14  ;;  %vm1235_vm14 = vcmp.ge.f32.partialorder %v4055_v57, %v1200_v14  ;;  %1293 = vmax.xlane.f32.xlu1 %v1292_v26  ;;  %v1296_v1 = vmax.f32 %v1295_v5, %v4195_v13 }
 0x476   : > { %v4202_v35 = vsel %vm1233_vm12, -inf, %v4042_v4  ;;  %v4205_v12 = vsel %vm1234_vm13, -inf, %v4045_v18  ;;  %vm1236_vm15 = vcmp.ge.f32.partialorder %v4068_v61, %v1200_v14  ;;  %v4215_v26 = vsel %vm1235_vm14, -inf, %v4055_v57 }
 0x477   : > { %v1297_v63 = vmax.f32 %v1296_v1, %v4208_v6  ;;  %v1300_v10 = vmax.f32 %v4202_v35, %v4205_v12  ;;  %v4228_v5 = vsel %vm1236_vm15, -inf, %v4068_v61 }
 0x478   : > { %v1205_v22 = vpop.xlane.xlu0 %1204 }
 0x479   : > { %vm1237_vm0 = vcmp.ge.f32.partialorder %v4062_v54, %v1205_v22  ;;  %vm1238_vm1 = vcmp.ge.f32.partialorder %v4065_v43, %v1205_v22  ;;  %vm1239_vm2 = vcmp.ge.f32.partialorder %v4075_v60, %v1205_v22  ;;  %1298 = vmax.xlane.f32.xlu0 %v1297_v63  ;;  %v1301_v4 = vmax.f32 %v1300_v10, %v4215_v26 }
 0x47a   : > { %v4222_v18 = vsel %vm1237_vm0, -inf, %v4062_v54  ;;  %v4225_v17 = vsel %vm1238_vm1, -inf, %v4065_v43  ;;  %vm1240_vm3 = vcmp.ge.f32.partialorder %v4088_v3, %v1205_v22  ;;  %v4235_v63 = vsel %vm1239_vm2, -inf, %v4075_v60 }
 0x47b   : > { %v1302_v57 = vmax.f32 %v1301_v4, %v4228_v5  ;;  %v1305_v14 = vmax.f32 %v4222_v18, %v4225_v17  ;;  %v4248_v10 = vsel %vm1240_vm3, -inf, %v4088_v3 }
 0x47c   : > { %v1210_v1 = vpop.xlane.xlu1 %1209 }
 0x47d   : > { %vm1241_vm4 = vcmp.ge.f32.partialorder %v4082_v25, %v1210_v1  ;;  %vm1242_vm5 = vcmp.ge.f32.partialorder %v4085_v50, %v1210_v1  ;;  %vm1243_vm6 = vcmp.ge.f32.partialorder %v4095_v45, %v1210_v1  ;;  %1303 = vmax.xlane.f32.xlu1 %v1302_v57  ;;  %v1306_v54 = vmax.f32 %v1305_v14, %v4235_v63 }
 0x47e   : > { %v4242_v43 = vsel %vm1241_vm4, -inf, %v4082_v25  ;;  %v4245_v61 = vsel %vm1242_vm5, -inf, %v4085_v50  ;;  %vm1244_vm7 = vcmp.ge.f32.partialorder %v4108_v48, %v1210_v1  ;;  %v4255_v57 = vsel %vm1243_vm6, -inf, %v4095_v45 }
 0x47f   : > { %v1307_v60 = vmax.f32 %v1306_v54, %v4248_v10  ;;  %v1310_v22 = vmax.f32 %v4242_v43, %v4245_v61  ;;  %v4268_v14 = vsel %vm1244_vm7, -inf, %v4108_v48 }
 0x481   : > { %v1215_v4 = vpop.xlane.xlu0 %1214  ;;  %1308 = vmax.xlane.f32.xlu0 %v1307_v60  ;;  %v1311_v25 = vmax.f32 %v1310_v22, %v4255_v57 }
 0x482   : > { %vm1245_vm8 = vcmp.ge.f32.partialorder %v4102_v46, %v1215_v4  ;;  %vm1246_vm9 = vcmp.ge.f32.partialorder %v4105_v16, %v1215_v4  ;;  %vm1247_vm10 = vcmp.ge.f32.partialorder %v4118_v23, %v1215_v4  ;;  %vm1248_vm11 = vcmp.ge.f32.partialorder %v4128_v41, %v1215_v4 }
 0x483   : > { %v4262_v50 = vsel %vm1245_vm8, -inf, %v4102_v46  ;;  %v4265_v3 = vsel %vm1246_vm9, -inf, %v4105_v16  ;;  %v1312_v1 = vmax.f32 %v1311_v25, %v4268_v14  ;;  %v4278_v46 = vsel %vm1247_vm10, -inf, %v4118_v23 }
 0x484   : > { %v1220_v45 = vpop.xlane.xlu1 %1219  ;;  %v1315_v54 = vmax.f32 %v4262_v50, %v4265_v3  ;;  %v4288_v22 = vsel %vm1248_vm11, -inf, %v4128_v41 }
 0x485   : > { %vm1249_vm12 = vcmp.ge.f32.partialorder %v4121_v24, %v1220_v45  ;;  %vm1250_vm13 = vcmp.ge.f32.partialorder %v4124_v27, %v1220_v45  ;;  %vm1251_vm14 = vcmp.ge.f32.partialorder %v4135_v59, %v1220_v45  ;;  %1313 = vmax.xlane.f32.xlu1 %v1312_v1  ;;  %vm1252_vm15 = vcmp.ge.f32.partialorder %v4139_v34, %v1220_v45 }
 0x486   : > { %v4281_v16 = vsel %vm1249_vm12, -inf, %v4121_v24  ;;  %v4284_v48 = vsel %vm1250_vm13, -inf, %v4124_v27  ;;  %v1316_v60 = vmax.f32 %v1315_v54, %v4278_v46  ;;  %v4295_v25 = vsel %vm1251_vm14, -inf, %v4135_v59 }
 0x487   : > { %v1320_v4 = vmax.f32 %v4281_v16, %v4284_v48  ;;  %v4299_v27 = vsel %vm1252_vm15, -inf, %v4139_v34 }
 0x488   : > { %v1317_v23 = vmax.f32 %v1316_v60, %v4288_v22 }
 0x489   : > { %v1321_v24 = vmax.f32 %v1320_v4, %v4295_v25 }
 0x48a   : > { %1318 = vmax.xlane.f32.xlu0 %v1317_v23 }
 0x48b   : > { %v1322_v1 = vmax.f32 %v1321_v24, %v4299_v27 }
 0x48d   : > { %1323 = vmax.xlane.f32.xlu1 %v1322_v1 }
 0x4fa   : > { %v1289_v41 = vpop.xlane.xlu0 %1288 }
 0x4fb   : > { %vm1325_vm0 = vcmp.ge.f32.partialorder %v4146_v40, %v1289_v41  ;;  %vm1326_vm1 = vcmp.ge.f32.partialorder %v4149_v52, %v1289_v41  ;;  %vm1327_vm2 = vcmp.ge.f32.partialorder %v4155_v21, %v1289_v41  ;;  %vm1328_vm3 = vcmp.ge.f32.partialorder %v4168_v30, %v1289_v41 }
 0x4fc   : > { %v4306_v45 = vsel %vm1325_vm0, -inf, %v4146_v40  ;;  %v4309_v59 = vsel %vm1326_vm1, -inf, %v4149_v52  ;;  %v4315_v60 = vsel %vm1327_vm2, -inf, %v4155_v21  ;;  %v4328_v23 = vsel %vm1328_vm3, -inf, %v4168_v30 }
 0x4fd   : > { %v1389_v34 = vmax.f32 %v4306_v45, %v4309_v59 }
 0x4fe   : > { %v1294_v54 = vpop.xlane.xlu1 %1293 }
 0x4ff   : > { %vm1329_vm4 = vcmp.ge.f32.partialorder %v4162_v37, %v1294_v54  ;;  %vm1330_vm5 = vcmp.ge.f32.partialorder %v4165_v28, %v1294_v54  ;;  %vm1331_vm6 = vcmp.ge.f32.partialorder %v4175_v11, %v1294_v54  ;;  %v1390_v40 = vmax.f32 %v1389_v34, %v4315_v60 }
 0x500   : > { %v4322_v52 = vsel %vm1329_vm4, -inf, %v4162_v37  ;;  %v4325_v4 = vsel %vm1330_vm5, -inf, %v4165_v28  ;;  %vm1332_vm7 = vcmp.ge.f32.partialorder %v4188_v55, %v1294_v54  ;;  %v4335_v41 = vsel %vm1331_vm6, -inf, %v4175_v11 }
 0x501   : > { %v1391_v21 = vmax.f32 %v1390_v40, %v4328_v23  ;;  %v1394_v24 = vmax.f32 %v4322_v52, %v4325_v4  ;;  %v4348_v34 = vsel %vm1332_vm7, -inf, %v4188_v55 }
 0x502   : > { %v1299_v1 = vpop.xlane.xlu0 %1298 }
 0x503   : > { %vm1333_vm8 = vcmp.ge.f32.partialorder %v4182_v39, %v1299_v1  ;;  %vm1334_vm9 = vcmp.ge.f32.partialorder %v4185_v8, %v1299_v1  ;;  %vm1335_vm10 = vcmp.ge.f32.partialorder %v4195_v13, %v1299_v1  ;;  %1392 = vmax.xlane.f32.xlu0 %v1391_v21  ;;  %v1395_v37 = vmax.f32 %v1394_v24, %v4335_v41 }
 0x504   : > { %v4342_v28 = vsel %vm1333_vm8, -inf, %v4182_v39  ;;  %v4345_v30 = vsel %vm1334_vm9, -inf, %v4185_v8  ;;  %vm1336_vm11 = vcmp.ge.f32.partialorder %v4208_v6, %v1299_v1  ;;  %v4355_v21 = vsel %vm1335_vm10, -inf, %v4195_v13 }
 0x505   : > { %v1396_v11 = vmax.f32 %v1395_v37, %v4348_v34  ;;  %v1399_v54 = vmax.f32 %v4342_v28, %v4345_v30  ;;  %v4368_v24 = vsel %vm1336_vm11, -inf, %v4208_v6 }
 0x506   : > { %v1304_v40 = vpop.xlane.xlu1 %1303 }
 0x507   : > { %vm1337_vm12 = vcmp.ge.f32.partialorder %v4202_v35, %v1304_v40  ;;  %vm1338_vm13 = vcmp.ge.f32.partialorder %v4205_v12, %v1304_v40  ;;  %vm1339_vm14 = vcmp.ge.f32.partialorder %v4215_v26, %v1304_v40  ;;  %1397 = vmax.xlane.f32.xlu1 %v1396_v11  ;;  %v1400_v39 = vmax.f32 %v1399_v54, %v4355_v21 }
 0x508   : > { %v4362_v8 = vsel %vm1337_vm12, -inf, %v4202_v35  ;;  %v4365_v55 = vsel %vm1338_vm13, -inf, %v4205_v12  ;;  %vm1340_vm15 = vcmp.ge.f32.partialorder %v4228_v5, %v1304_v40  ;;  %v4375_v11 = vsel %vm1339_vm14, -inf, %v4215_v26 }
 0x509   : > { %v1401_v13 = vmax.f32 %v1400_v39, %v4368_v24  ;;  %v1404_v1 = vmax.f32 %v4362_v8, %v4365_v55  ;;  %v4388_v54 = vsel %vm1340_vm15, -inf, %v4228_v5 }
 0x50a   : > { %v1309_v37 = vpop.xlane.xlu0 %1308 }
 0x50b   : > { %vm1341_vm0 = vcmp.ge.f32.partialorder %v4222_v18, %v1309_v37  ;;  %vm1342_vm1 = vcmp.ge.f32.partialorder %v4225_v17, %v1309_v37  ;;  %vm1343_vm2 = vcmp.ge.f32.partialorder %v4235_v63, %v1309_v37  ;;  %1402 = vmax.xlane.f32.xlu0 %v1401_v13  ;;  %v1405_v35 = vmax.f32 %v1404_v1, %v4375_v11 }
 0x50c   : > { %v4382_v12 = vsel %vm1341_vm0, -inf, %v4222_v18  ;;  %v4385_v6 = vsel %vm1342_vm1, -inf, %v4225_v17  ;;  %vm1344_vm3 = vcmp.ge.f32.partialorder %v4248_v10, %v1309_v37  ;;  %v4395_v13 = vsel %vm1343_vm2, -inf, %v4235_v63 }
 0x50d   : > { %v1406_v26 = vmax.f32 %v1405_v35, %v4388_v54  ;;  %v1409_v40 = vmax.f32 %v4382_v12, %v4385_v6  ;;  %v4408_v1 = vsel %vm1344_vm3, -inf, %v4248_v10 }
 0x50e   : > { %v1314_v39 = vpop.xlane.xlu1 %1313 }
 0x50f   : > { %vm1345_vm4 = vcmp.ge.f32.partialorder %v4242_v43, %v1314_v39  ;;  %vm1346_vm5 = vcmp.ge.f32.partialorder %v4245_v61, %v1314_v39  ;;  %vm1347_vm6 = vcmp.ge.f32.partialorder %v4255_v57, %v1314_v39  ;;  %1407 = vmax.xlane.f32.xlu1 %v1406_v26  ;;  %v1410_v18 = vmax.f32 %v1409_v40, %v4395_v13 }
 0x510   : > { %v4402_v17 = vsel %vm1345_vm4, -inf, %v4242_v43  ;;  %v4405_v5 = vsel %vm1346_vm5, -inf, %v4245_v61  ;;  %vm1348_vm7 = vcmp.ge.f32.partialorder %v4268_v14, %v1314_v39  ;;  %v4415_v26 = vsel %vm1347_vm6, -inf, %v4255_v57 }
 0x511   : > { %v1411_v63 = vmax.f32 %v1410_v18, %v4408_v1  ;;  %v1414_v37 = vmax.f32 %v4402_v17, %v4405_v5  ;;  %v4428_v40 = vsel %vm1348_vm7, -inf, %v4268_v14 }
 0x513   : > { %v1319_v35 = vpop.xlane.xlu0 %1318  ;;  %1412 = vmax.xlane.f32.xlu0 %v1411_v63  ;;  %v1415_v43 = vmax.f32 %v1414_v37, %v4415_v26 }
 0x514   : > { %vm1349_vm8 = vcmp.ge.f32.partialorder %v4262_v50, %v1319_v35  ;;  %vm1350_vm9 = vcmp.ge.f32.partialorder %v4265_v3, %v1319_v35  ;;  %vm1351_vm10 = vcmp.ge.f32.partialorder %v4278_v46, %v1319_v35  ;;  %vm1352_vm11 = vcmp.ge.f32.partialorder %v4288_v22, %v1319_v35 }
 0x515   : > { %v4422_v61 = vsel %vm1349_vm8, -inf, %v4262_v50  ;;  %v4425_v10 = vsel %vm1350_vm9, -inf, %v4265_v3  ;;  %v1416_v39 = vmax.f32 %v1415_v43, %v4428_v40  ;;  %v4438_v50 = vsel %vm1351_vm10, -inf, %v4278_v46 }
 0x516   : > { %v1324_v57 = vpop.xlane.xlu1 %1323  ;;  %v1419_v18 = vmax.f32 %v4422_v61, %v4425_v10  ;;  %v4448_v37 = vsel %vm1352_vm11, -inf, %v4288_v22 }
 0x517   : > { %vm1353_vm12 = vcmp.ge.f32.partialorder %v4281_v16, %v1324_v57  ;;  %vm1354_vm13 = vcmp.ge.f32.partialorder %v4284_v48, %v1324_v57  ;;  %vm1355_vm14 = vcmp.ge.f32.partialorder %v4295_v25, %v1324_v57  ;;  %1417 = vmax.xlane.f32.xlu1 %v1416_v39  ;;  %vm1356_vm15 = vcmp.ge.f32.partialorder %v4299_v27, %v1324_v57 }
 0x518   : > { %v4441_v3 = vsel %vm1353_vm12, -inf, %v4281_v16  ;;  %v4444_v14 = vsel %vm1354_vm13, -inf, %v4284_v48  ;;  %v1420_v63 = vmax.f32 %v1419_v18, %v4438_v50  ;;  %v4455_v43 = vsel %vm1355_vm14, -inf, %v4295_v25 }
 0x519   : > { %v1424_v35 = vmax.f32 %v4441_v3, %v4444_v14  ;;  %v4459_v48 = vsel %vm1356_vm15, -inf, %v4299_v27 }
 0x51a   : > { %v1421_v46 = vmax.f32 %v1420_v63, %v4448_v37 }
 0x51b   : > { %v1425_v16 = vmax.f32 %v1424_v35, %v4455_v43 }
 0x51c   : > { %1422 = vmax.xlane.f32.xlu0 %v1421_v46 }
 0x51d   : > { %v1426_v39 = vmax.f32 %v1425_v16, %v4459_v48 }
 0x51f   : > { %1427 = vmax.xlane.f32.xlu1 %v1426_v39 }
 0x58c   : > { %v1393_v22 = vpop.xlane.xlu0 %1392 }
 0x58d   : > { %vm1429_vm0 = vcmp.ge.f32.partialorder %v4306_v45, %v1393_v22  ;;  %vm1430_vm1 = vcmp.ge.f32.partialorder %v4309_v59, %v1393_v22  ;;  %vm1431_vm2 = vcmp.ge.f32.partialorder %v4315_v60, %v1393_v22  ;;  %vm1432_vm3 = vcmp.ge.f32.partialorder %v4328_v23, %v1393_v22 }
 0x58e   : > { %v1461_v57 = vsel %vm1429_vm0, -inf, %v4306_v45  ;;  %v1462_v25 = vsel %vm1430_vm1, -inf, %v4309_v59  ;;  %v1463_v27 = vsel %vm1431_vm2, -inf, %v4315_v60  ;;  %v1464_v46 = vsel %vm1432_vm3, -inf, %v4328_v23 }
 0x58f   : > { %v1493_v18 = vmax.f32 %v1461_v57, %v1462_v25 }
 0x590   : > { %v1398_v63 = vpop.xlane.xlu1 %1397 }
 0x591   : > { %vm1433_vm4 = vcmp.ge.f32.partialorder %v4322_v52, %v1398_v63  ;;  %vm1434_vm5 = vcmp.ge.f32.partialorder %v4325_v4, %v1398_v63  ;;  %v1494_v35 = vmax.f32 %v1493_v18, %v1463_v27  ;;  %vm1435_vm6 = vcmp.ge.f32.partialorder %v4335_v41, %v1398_v63 }
 0x592   : > { %v1465_v16 = vsel %vm1433_vm4, -inf, %v4322_v52  ;;  %v1466_v45 = vsel %vm1434_vm5, -inf, %v4325_v4  ;;  %vm1436_vm7 = vcmp.ge.f32.partialorder %v4348_v34, %v1398_v63  ;;  %v1467_v60 = vsel %vm1435_vm6, -inf, %v4335_v41 }
 0x593   : > { %v1495_v59 = vmax.f32 %v1494_v35, %v1464_v46  ;;  %v1498_v39 = vmax.f32 %v1465_v16, %v1466_v45  ;;  %v1468_v23 = vsel %vm1436_vm7, -inf, %v4348_v34 }
 0x594   : > { %v1403_v22 = vpop.xlane.xlu0 %1402 }
 0x595   : > { %vm1437_vm8 = vcmp.ge.f32.partialorder %v4342_v28, %v1403_v22  ;;  %vm1438_vm9 = vcmp.ge.f32.partialorder %v4345_v30, %v1403_v22  ;;  %1496 = vmax.xlane.f32.xlu0 %v1495_v59  ;;  %v1499_v57 = vmax.f32 %v1498_v39, %v1467_v60  ;;  %vm1439_vm10 = vcmp.ge.f32.partialorder %v4355_v21, %v1403_v22 }
 0x596   : > { %v1469_v52 = vsel %vm1437_vm8, -inf, %v4342_v28  ;;  %v1470_v4 = vsel %vm1438_vm9, -inf, %v4345_v30  ;;  %vm1440_vm11 = vcmp.ge.f32.partialorder %v4368_v24, %v1403_v22  ;;  %v1471_v41 = vsel %vm1439_vm10, -inf, %v4355_v21 }
 0x597   : > { %v1500_v25 = vmax.f32 %v1499_v57, %v1468_v23  ;;  %v1503_v18 = vmax.f32 %v1469_v52, %v1470_v4  ;;  %v1472_v34 = vsel %vm1440_vm11, -inf, %v4368_v24 }
 0x598   : > { %v1408_v63 = vpop.xlane.xlu1 %1407 }
 0x599   : > { %vm1441_vm12 = vcmp.ge.f32.partialorder %v4362_v8, %v1408_v63  ;;  %vm1442_vm13 = vcmp.ge.f32.partialorder %v4365_v55, %v1408_v63  ;;  %1501 = vmax.xlane.f32.xlu1 %v1500_v25  ;;  %v1504_v27 = vmax.f32 %v1503_v18, %v1471_v41  ;;  %vm1443_vm14 = vcmp.ge.f32.partialorder %v4375_v11, %v1408_v63 }
 0x59a   : > { %v1473_v28 = vsel %vm1441_vm12, -inf, %v4362_v8  ;;  %v1474_v30 = vsel %vm1442_vm13, -inf, %v4365_v55  ;;  %vm1444_vm15 = vcmp.ge.f32.partialorder %v4388_v54, %v1408_v63  ;;  %v1475_v21 = vsel %vm1443_vm14, -inf, %v4375_v11 }
 0x59b   : > { %v1505_v35 = vmax.f32 %v1504_v27, %v1472_v34  ;;  %v1508_v46 = vmax.f32 %v1473_v28, %v1474_v30  ;;  %v1476_v24 = vsel %vm1444_vm15, -inf, %v4388_v54 }
 0x59c   : > { %v1413_v16 = vpop.xlane.xlu0 %1412 }
 0x59d   : > { %vm1445_vm0 = vcmp.ge.f32.partialorder %v4382_v12, %v1413_v16  ;;  %vm1446_vm1 = vcmp.ge.f32.partialorder %v4385_v6, %v1413_v16  ;;  %1506 = vmax.xlane.f32.xlu0 %v1505_v35  ;;  %v1509_v45 = vmax.f32 %v1508_v46, %v1475_v21  ;;  %vm1447_vm2 = vcmp.ge.f32.partialorder %v4395_v13, %v1413_v16 }
 0x59e   : > { %v1477_v8 = vsel %vm1445_vm0, -inf, %v4382_v12  ;;  %v1478_v55 = vsel %vm1446_vm1, -inf, %v4385_v6  ;;  %vm1448_vm3 = vcmp.ge.f32.partialorder %v4408_v1, %v1413_v16  ;;  %v1479_v11 = vsel %vm1447_vm2, -inf, %v4395_v13 }
 0x59f   : > { %v1510_v59 = vmax.f32 %v1509_v45, %v1476_v24  ;;  %v1513_v39 = vmax.f32 %v1477_v8, %v1478_v55  ;;  %v1480_v54 = vsel %vm1448_vm3, -inf, %v4408_v1 }
 0x5a0   : > { %v1418_v22 = vpop.xlane.xlu1 %1417 }
 0x5a1   : > { %vm1449_vm4 = vcmp.ge.f32.partialorder %v4402_v17, %v1418_v22  ;;  %vm1450_vm5 = vcmp.ge.f32.partialorder %v4405_v5, %v1418_v22  ;;  %1511 = vmax.xlane.f32.xlu1 %v1510_v59  ;;  %v1514_v60 = vmax.f32 %v1513_v39, %v1479_v11  ;;  %vm1451_vm6 = vcmp.ge.f32.partialorder %v4415_v26, %v1418_v22 }
 0x5a2   : > { %v1481_v12 = vsel %vm1449_vm4, -inf, %v4402_v17  ;;  %v1482_v6 = vsel %vm1450_vm5, -inf, %v4405_v5  ;;  %vm1452_vm7 = vcmp.ge.f32.partialorder %v4428_v40, %v1418_v22  ;;  %v1483_v13 = vsel %vm1451_vm6, -inf, %v4415_v26 }
 0x5a3   : > { %v1515_v57 = vmax.f32 %v1514_v60, %v1480_v54  ;;  %v1518_v23 = vmax.f32 %v1481_v12, %v1482_v6  ;;  %v1484_v1 = vsel %vm1452_vm7, -inf, %v4428_v40 }
 0x5a5   : > { %v1423_v52 = vpop.xlane.xlu0 %1422  ;;  %1516 = vmax.xlane.f32.xlu0 %v1515_v57  ;;  %v1519_v4 = vmax.f32 %v1518_v23, %v1483_v13 }
 0x5a6   : > { %vm1453_vm8 = vcmp.ge.f32.partialorder %v4422_v61, %v1423_v52  ;;  %vm1454_vm9 = vcmp.ge.f32.partialorder %v4425_v10, %v1423_v52  ;;  %vm1455_vm10 = vcmp.ge.f32.partialorder %v4438_v50, %v1423_v52  ;;  %vm1456_vm11 = vcmp.ge.f32.partialorder %v4448_v37, %v1423_v52 }
 0x5a7   : > { %v1485_v17 = vsel %vm1453_vm8, -inf, %v4422_v61  ;;  %v1486_v5 = vsel %vm1454_vm9, -inf, %v4425_v10  ;;  %v1520_v18 = vmax.f32 %v1519_v4, %v1484_v1  ;;  %v1487_v26 = vsel %vm1455_vm10, -inf, %v4438_v50 }
 0x5a8   : > { %v1428_v25 = vpop.xlane.xlu1 %1427  ;;  %v1523_v63 = vmax.f32 %v1485_v17, %v1486_v5  ;;  %v1488_v10 = vsel %vm1456_vm11, -inf, %v4448_v37 }
 0x5a9   : > { %vm1457_vm12 = vcmp.ge.f32.partialorder %v4441_v3, %v1428_v25  ;;  %vm1458_vm13 = vcmp.ge.f32.partialorder %v4444_v14, %v1428_v25  ;;  %vm1459_vm14 = vcmp.ge.f32.partialorder %v4455_v43, %v1428_v25  ;;  %1521 = vmax.xlane.f32.xlu1 %v1520_v18  ;;  %vm1460_vm15 = vcmp.ge.f32.partialorder %v4459_v48, %v1428_v25 }
 0x5aa   : > { %v1524_v41 = vmax.f32 %v1523_v63, %v1487_v26  ;;  %v1489_v40 = vsel %vm1457_vm12, -inf, %v4441_v3  ;;  %v1490_v61 = vsel %vm1458_vm13, -inf, %v4444_v14  ;;  %v1491_v28 = vsel %vm1459_vm14, -inf, %v4455_v43 }
 0x5ab   : > { %v1528_v27 = vmax.f32 %v1489_v40, %v1490_v61  ;;  %v1492_v50 = vsel %vm1460_vm15, -inf, %v4459_v48  ;;  %v2914_v14 = vmov 0.0  }
 0x5ac   : > { %v1525_v34 = vmax.f32 %v1524_v41, %v1488_v10 }
 0x5ad   : > { %v1529_v30 = vmax.f32 %v1528_v27, %v1491_v28 }
 0x5ae   : > { %1526 = vmax.xlane.f32.xlu0 %v1525_v34 }
 0x5af   : > { %v1530_v35 = vmax.f32 %v1529_v30, %v1492_v50 }
 0x5b1   : > { %1531 = vmax.xlane.f32.xlu1 %v1530_v35 }
 0x61e   : > { %v4526_v46 = vpop.xlane.xlu0 %1496 }
 0x61f   : > { %vm1533_vm0 = vcmp.ge.f32.partialorder %v3343_v31, %v4526_v46  ;;  %vm1534_vm1 = vcmp.ge.f32.partialorder %v3350_v36, %v4526_v46  ;;  %vm1535_vm2 = vcmp.ge.f32.partialorder %v3346_v32, %v4526_v46  ;;  %vm1536_vm3 = vcmp.ge.f32.partialorder %v3354_v38, %v4526_v46 }
 0x620   : > { %v2329_v21 = vsel %vm1533_vm0, 1.0, %v2914_v14  ;;  %v2330_v45 = vsel %vm1534_vm1, 1.0, %v2914_v14  ;;  %v2331_v24 = vsel %vm1535_vm2, 1.0, %v2914_v14  ;;  %v2332_v8 = vsel %vm1536_vm3, 1.0, %v2914_v14 }
 0x622   : > { %v4536_v3 = vpop.xlane.xlu1 %1501 }
 0x623   : > { %vm1537_vm4 = vcmp.ge.f32.partialorder %v3358_v42, %v4536_v3  ;;  %vm1538_vm5 = vcmp.ge.f32.partialorder %v3368_v49, %v4536_v3  ;;  %vm1539_vm6 = vcmp.ge.f32.partialorder %v3362_v44, %v4536_v3  ;;  %vm1540_vm7 = vcmp.ge.f32.partialorder %v3372_v51, %v4536_v3 }
 0x624   : > { %v2333_v37 = vsel %vm1537_vm4, 1.0, %v2914_v14  ;;  %v2334_v43 = vsel %vm1538_vm5, 1.0, %v2914_v14  ;;  %v2335_v48 = vsel %vm1539_vm6, 1.0, %v2914_v14  ;;  %v2336_v16 = vsel %vm1540_vm7, 1.0, %v2914_v14 }
 0x625   : > { %v1693_v55 = vadd.f32 %v2333_v37, %v2329_v21  ;;  %v1706_v59 = vadd.f32 %v2334_v43, %v2330_v45  ;;  %v1719_v39 = vadd.f32 %v2335_v48, %v2331_v24  ;;  %v1732_v22 = vadd.f32 %v2336_v16, %v2332_v8  ;;  %v5228_v43 = vld [vmem:[#allocation33_spill] sm:$0xff]  ;;  %v5229_v48 = vld [vmem:[#allocation34_spill] sm:$0xff] }
 0x626   : > { %v4578_v11 = vpop.xlane.xlu0 %1506 }
 0x627   : > { %vm1541_vm8 = vcmp.ge.f32.partialorder %v3377_v56, %v4578_v11  ;;  %vm1542_vm9 = vcmp.ge.f32.partialorder %v3388_v0, %v4578_v11  ;;  %vm5160_vm10 = vcmp.ge.f32.partialorder %v3381_v58, %v4578_v11  ;;  %vm1544_vm11 = vcmp.ge.f32.partialorder %v3392_v2, %v4578_v11 }
 0x628   : > { %v2337_v60 = vsel %vm1541_vm8, 1.0, %v2914_v14  ;;  %v2338_v54 = vsel %vm1542_vm9, 1.0, %v2914_v14  ;;  %v2339_v12 = vsel %vm5160_vm10, 1.0, %v2914_v14  ;;  %v2340_v6 = vsel %vm1544_vm11, 1.0, %v2914_v14 }
 0x629   : > { %v1694_v57 = vadd.f32 %v2337_v60, %v1693_v55  ;;  %v1707_v23 = vadd.f32 %v2338_v54, %v1706_v59  ;;  %v1720_v52 = vadd.f32 %v2339_v12, %v1719_v39  ;;  %v1733_v13 = vadd.f32 %v2340_v6, %v1732_v22  ;;  %v5230_v60 = vld [vmem:[#allocation35_spill] sm:$0xff]  ;;  %v5231_v54 = vld [vmem:[#allocation37_spill] sm:$0xff]  ;;  %v5232_v12 = vld [vmem:[#allocation36_spill] sm:$0xff] }
 0x62a   : > { %v4604_v4 = vpop.xlane.xlu1 %1511  ;;  %v5233_v6 = vld [vmem:[#allocation38_spill] sm:$0xff] }
 0x62b   : > { %vm5157_vm12 = vcmp.ge.f32.partialorder %v3397_v7, %v4604_v4  ;;  %vm5158_vm13 = vcmp.ge.f32.partialorder %v3408_v15, %v4604_v4  ;;  %vm5159_vm14 = vcmp.ge.f32.partialorder %v3401_v9, %v4604_v4  ;;  %vm5164_vm15 = vcmp.ge.f32.partialorder %v3412_v19, %v4604_v4 }
 0x62c   : > { %v2341_v1 = vsel %vm5157_vm12, 1.0, %v2914_v14  ;;  %v2342_v17 = vsel %vm5158_vm13, 1.0, %v2914_v14  ;;  %v2343_v5 = vsel %vm5159_vm14, 1.0, %v2914_v14  ;;  %v2344_v25 = vsel %vm5164_vm15, 1.0, %v2914_v14 }
 0x62d   : > { %v1695_v18 = vadd.f32 %v2341_v1, %v1694_v57  ;;  %v1708_v63 = vadd.f32 %v2342_v17, %v1707_v23  ;;  %v1721_v26 = vadd.f32 %v2343_v5, %v1720_v52  ;;  %v1734_v41 = vadd.f32 %v2344_v25, %v1733_v13 }
 0x62e   : > { %v4630_v40 = vpop.xlane.xlu0 %1516 }
 0x62f   : > { %vm5161_vm12 = vcmp.ge.f32.partialorder %v3417_v29, %v4630_v40  ;;  %vm5162_vm13 = vcmp.ge.f32.partialorder %v3428_v47, %v4630_v40  ;;  %vm5163_vm14 = vcmp.ge.f32.partialorder %v3421_v33, %v4630_v40  ;;  %vm5168_vm10 = vcmp.ge.f32.partialorder %v3432_v53, %v4630_v40 }
 0x630   : > { %v2345_v61 = vsel %vm5161_vm12, 1.0, %v2914_v14  ;;  %v2346_v10 = vsel %vm5162_vm13, 1.0, %v2914_v14  ;;  %v2347_v27 = vsel %vm5163_vm14, 1.0, %v2914_v14  ;;  %v2348_v34 = vsel %vm5168_vm10, 1.0, %v2914_v14 }
 0x631   : > { %v1696_v28 = vadd.f32 %v2345_v61, %v1695_v18  ;;  %v1709_v30 = vadd.f32 %v2346_v10, %v1708_v63  ;;  %v1722_v50 = vadd.f32 %v2347_v27, %v1721_v26  ;;  %v1735_v35 = vadd.f32 %v2348_v34, %v1734_v41  ;;  %v5234_v63 = vld [vmem:[#allocation39_spill] sm:$0xff]  ;;  %v5235_v26 = vld [vmem:[#allocation41_spill] sm:$0xff]  ;;  %v5236_v41 = vld [vmem:[#allocation40_spill] sm:$0xff] }
 0x632   : > { %v4656_v37 = vpop.xlane.xlu1 %1521  ;;  %v5237_v61 = vld [vmem:[#allocation42_spill] sm:$0xff] }
 0x633   : > { %vm5165_vm12 = vcmp.ge.f32.partialorder %v3437_v62, %v4656_v37  ;;  %vm5166_vm13 = vcmp.ge.f32.partialorder %v3448_v20, %v4656_v37  ;;  %vm5167_vm14 = vcmp.ge.f32.partialorder %v5228_v43, %v4656_v37  ;;  %vm5172_vm15 = vcmp.ge.f32.partialorder %v5229_v48, %v4656_v37 }
 0x634   : > { %v2349_v16 = vsel %vm5165_vm12, 1.0, %v2914_v14  ;;  %v2350_v21 = vsel %vm5166_vm13, 1.0, %v2914_v14  ;;  %v2351_v45 = vsel %vm5167_vm14, 1.0, %v2914_v14  ;;  %v2352_v24 = vsel %vm5172_vm15, 1.0, %v2914_v14 }
 0x635   : > { %v1697_v8 = vadd.f32 %v2349_v16, %v1696_v28  ;;  %v1710_v55 = vadd.f32 %v2350_v21, %v1709_v30  ;;  %v1723_v59 = vadd.f32 %v2351_v45, %v1722_v50  ;;  %v1736_v39 = vadd.f32 %v2352_v24, %v1735_v35 }
 0x637   : > { %v4682_v22 = vpop.xlane.xlu0 %1526 }
 0x638   : > { %vm5169_vm12 = vcmp.ge.f32.partialorder %v5230_v60, %v4682_v22  ;;  %vm5170_vm13 = vcmp.ge.f32.partialorder %v5231_v54, %v4682_v22  ;;  %vm5171_vm14 = vcmp.ge.f32.partialorder %v5232_v12, %v4682_v22  ;;  %vm1560_vm10 = vcmp.ge.f32.partialorder %v5233_v6, %v4682_v22 }
 0x639   : > { %v2353_v57 = vsel %vm5169_vm12, 1.0, %v2914_v14  ;;  %v2354_v23 = vsel %vm5170_vm13, 1.0, %v2914_v14  ;;  %v2355_v52 = vsel %vm5171_vm14, 1.0, %v2914_v14  ;;  %v2356_v13 = vsel %vm1560_vm10, 1.0, %v2914_v14 }
 0x63a   : > { %v1698_v1 = vadd.f32 %v2353_v57, %v1697_v8  ;;  %v1711_v17 = vadd.f32 %v2354_v23, %v1710_v55  ;;  %v1724_v5 = vadd.f32 %v2355_v52, %v1723_v59  ;;  %v1737_v25 = vadd.f32 %v2356_v13, %v1736_v39  ;;  %v4708_v18 = vpop.xlane.xlu1 %1531 }
 0x63b   : > { %vm1561_vm12 = vcmp.ge.f32.partialorder %v5234_v63, %v4708_v18  ;;  %vm1562_vm13 = vcmp.ge.f32.partialorder %v5235_v26, %v4708_v18  ;;  %vm5173_vm14 = vcmp.ge.f32.partialorder %v5236_v41, %v4708_v18  ;;  %vm1564_vm15 = vcmp.ge.f32.partialorder %v5237_v61, %v4708_v18 }
 0x63c   : > { %v2357_v10 = vsel %vm1561_vm12, 1.0, %v2914_v14  ;;  %v2358_v27 = vsel %vm1562_vm13, 1.0, %v2914_v14  ;;  %v2359_v34 = vsel %vm5173_vm14, 1.0, %v2914_v14  ;;  %v2360_v28 = vsel %vm1564_vm15, 1.0, %v2914_v14 }
 0x63d   : > { %v1699_v30 = vadd.f32 %v2357_v10, %v1698_v1  ;;  %v1712_v50 = vadd.f32 %v2358_v27, %v1711_v17  ;;  %v1725_v35 = vadd.f32 %v2359_v34, %v1724_v5  ;;  %v1738_v43 = vadd.f32 %v2360_v28, %v1737_v25 }
 0x63f   : > { %v1700_v48 = vrot.slane %v1699_v30, 4  ;;  %v1713_v16 = vrot.slane %v1712_v50, 4  ;;  %v1726_v21 = vrot.slane %v1725_v35, 4  ;;  %v1739_v45 = vrot.slane %v1738_v43, 4 }
 0x641   : > { %v1701_v24 = vadd.f32 %v1700_v48, %v1699_v30  ;;  %v1714_v8 = vadd.f32 %v1713_v16, %v1712_v50  ;;  %v1727_v55 = vadd.f32 %v1726_v21, %v1725_v35  ;;  %v1740_v59 = vadd.f32 %v1739_v45, %v1738_v43 }
 0x643   : > { %v1702_v39 = vrot.slane %v1701_v24, 2  ;;  %v1715_v60 = vrot.slane %v1714_v8, 2  ;;  %v1728_v54 = vrot.slane %v1727_v55, 2  ;;  %v1741_v12 = vrot.slane %v1740_v59, 2 }
 0x645   : > { %v1703_v6 = vadd.f32 %v1702_v39, %v1701_v24  ;;  %v1716_v14 = vadd.f32 %v1715_v60, %v1714_v8  ;;  %v1729_v57 = vadd.f32 %v1728_v54, %v1727_v55  ;;  %v1742_v23 = vadd.f32 %v1741_v12, %v1740_v59  ;;  %1748 = sbr.rel (%p2361_p0) target bundleno = 1614 (0x64e), region = 60 }
 0x647   : > { %v1704_v52 = vrot.slane %v1703_v6, 1  ;;  %v1717_v13 = vrot.slane %v1716_v14, 1  ;;  %v1730_v1 = vrot.slane %v1729_v57, 1  ;;  %v1743_v17 = vrot.slane %v1742_v23, 1 }
 0x649   : > { %v4734_v5 = vadd.f32 %v1704_v52, %v1703_v6  ;;  %v4736_v25 = vadd.f32 %v1717_v13, %v1716_v14  ;;  %v4738_v63 = vadd.f32 %v1730_v1, %v1729_v57  ;;  %v4740_v26 = vadd.f32 %v1743_v17, %v1742_v23 }
 0x64a   : > { %v5239_v41 = vlaneseq  ;;  %v2915_v61 = vmov 0.0  }
 0x64c   : > { %vm1751_vm14 = vcmp.lt.s32.totalorder %v5239_v41, 512 }
 0x64d   : > { %1753 = vst.msk [vmem:[%s4748_s6] sm:$0xf] %vm1751_vm14, %v2915_v61 }
 0x64e PF: > { %v1851_v10 = vld [vmem:[%s3227_s21 + $0x1e8] sm:$0xff]  ;;  %v1853_v27 = vld [vmem:[%s3227_s21 + $0x1f8] sm:$0xff]  ;;  %v1850_v34 = vld [vmem:[%s3227_s21 + $0x1e0] sm:$0xff]  ;;  %v5240_v28 = vmax.f32 %v3350_v36, 0.0  ;;  %v5241_v30 = vmax.f32 %v3354_v38, 0.0  ;;  %vm5275_vm14 = vcmp.ge.f32.partialorder %v3437_v62, %v4656_v37  ;;  %s2406_s14 = sshll.u32 %s2892_s28, 6 }
 0x64f   : > { %1854 = vmatprep.subr.mxu0 %v1851_v10  ;;  %1959 = vmatprep.subr.mxu1 %v1853_v27  ;;  %v1852_v50 = vld [vmem:[%s3227_s21 + $0x1f0] sm:$0xff]  ;;  %v1847_v35 = vld [vmem:[%s3227_s21 + $0x1c8] sm:$0xff]  ;;  %v1849_v43 = vld [vmem:[%s3227_s21 + $0x1d8] sm:$0xff]  ;;  %s2110_s23 = sshll.u32 %s4748_s6, 4  ;;  %s5302_s18 = sld [smem:[#allocation47_spill]]  ;;  %s2111_s23 = int_to_ptr.vmem [resolvable:$true] %s2110_s23 }
 0x650   : > { %2362 = vmatprep.mubr.msk.f32.mxu0 %vm1534_vm1, %v5240_v28  ;;  %2378 = vmatprep.mubr.msk.f32.mxu1 %vm1536_vm3, %v5241_v30  ;;  %v1846_v36 = vld [vmem:[%s3227_s21 + $0x1c0] sm:$0xff]  ;;  %v1848_v48 = vld [vmem:[%s3227_s21 + $0x1d0] sm:$0xff]  ;;  %v1843_v16 = vld [vmem:[%s3227_s21 + $0x1a8] sm:$0xff]  ;;  %vm5254_vm1 = vcmp.ge.f32.partialorder %v3408_v15, %v4604_v4  ;;  %vm5258_vm3 = vcmp.ge.f32.partialorder %v3397_v7, %v4604_v4  ;;  %s2078_s27 = scalar_lea.sflag [#allocation12], %s3212_s20  ;;  %s2746_s12 = scalar_lea.vmem %s2111_s23, 64 }
 0x651   : > { %1855 = vmatpush1.xpose.msra.mxu0 %v1850_v34  ;;  %1960 = vmatpush1.xpose.msra.mxu1 %v1852_v50  ;;  %v1845_v38 = vld [vmem:[%s3227_s21 + $0x1b8] sm:$0xff]  ;;  %v1842_v21 = vld [vmem:[%s3227_s21 + $0x1a0] sm:$0xff]  ;;  %v1844_v45 = vld [vmem:[%s3227_s21 + $0x1b0] sm:$0xff]  ;;  %p2747_p6 = scmp.ne.s32.totalorder %s2111_s23, %s2746_s12  ;;  %s2917_s9 = smov [#allocation11]  }
 0x652   : > { %1856 = vmatprep.subr.mxu0 %v1847_v35  ;;  %1961 = vmatprep.subr.mxu1 %v1849_v43  ;;  %v1839_v24 = vld [vmem:[%s3227_s21 + $0x188] sm:$0xff]  ;;  %v1841_v8 = vld [vmem:[%s3227_s21 + $0x198] sm:$0xff]  ;;  %v1838_v55 = vld [vmem:[%s3227_s21 + $0x180] sm:$0xff]  ;;  %s2750_s1 = sshll.u32 %s2917_s9, 4  ;;  %s2751_s1 = int_to_ptr.vmem [resolvable:$false] %s2750_s1 }
 0x653   : > { %v1840_v59 = vld [vmem:[%s3227_s21 + $0x190] sm:$0xff]  ;;  %v1835_v39 = vld [vmem:[%s3227_s21 + $0x168] sm:$0xff]  ;;  %v1837_v60 = vld [vmem:[%s3227_s21 + $0x178] sm:$0xff]  ;;  %p2748_p8 = pnand %p2747_p6, %p3139_p2  ;;  %s2752_s13 = scalar_lea.vmem %s2751_s1, 128 }
 0x654   : > { %v1834_v54 = vld [vmem:[%s3227_s21 + $0x160] sm:$0xff]  ;;  %v1836_v12 = vld [vmem:[%s3227_s21 + $0x170] sm:$0xff]  ;;  %v1831_v6 = vld [vmem:[%s3227_s21 + $0x148] sm:$0xff]  ;;  %p2753_p4 = scmp.lt.s32.totalorder %s2111_s23, %s2751_s1  ;;  %p2754_p13 = scmp.lt.s32.totalorder %s2752_s13, %s2746_s12 }
 0x655   : > { %1857 = vmatpush1.xpose.msra.mxu0 %v1846_v36  ;;  %1962 = vmatpush1.xpose.msra.mxu1 %v1848_v48  ;;  %v1833_v14 = vld [vmem:[%s3227_s21 + $0x158] sm:$0xff]  ;;  %v1830_v57 = vld [vmem:[%s3227_s21 + $0x140] sm:$0xff]  ;;  %v1832_v23 = vld [vmem:[%s3227_s21 + $0x150] sm:$0xff]  ;;  %s2108_s26 = scalar_lea.hbm %s5302_s18, %s2406_s14  ;;  %p2749_p1 = pneg %p2748_p8 }
 0x656   : > { %1858 = vmatprep.subr.mxu0 %v1843_v16  ;;  %1963 = vmatprep.subr.mxu1 %v1845_v38  ;;  %v1827_v52 = vld [vmem:[%s3227_s21 + $0x128] sm:$0xff]  ;;  %v1829_v13 = vld [vmem:[%s3227_s21 + $0x138] sm:$0xff]  ;;  %v1826_v1 = vld [vmem:[%s3227_s21 + $0x120] sm:$0xff]  ;;  %p2755_p9 = por %p2754_p13, %p2753_p4 }
 0x657   : > { %v1828_v17 = vld [vmem:[%s3227_s21 + $0x130] sm:$0xff]  ;;  %v1823_v41 = vld [vmem:[%s3227_s21 + $0x108] sm:$0xff]  ;;  %v1825_v61 = vld [vmem:[%s3227_s21 + $0x118] sm:$0xff] }
 0x658   : > { %v1822_v10 = vld [vmem:[%s3227_s21 + $0x100] sm:$0xff]  ;;  %v1824_v27 = vld [vmem:[%s3227_s21 + $0x110] sm:$0xff]  ;;  %v1819_v34 = vld [vmem:[%s3227_s21 + $0xe8] sm:$0xff]  ;;  %p2756_p10 = pnand %p2755_p9, %p2749_p1 }
 0x659   : > { %1859 = vmatpush1.xpose.msra.mxu0 %v1842_v21  ;;  %1964 = vmatpush1.xpose.msra.mxu1 %v1844_v45  ;;  %v1821_v28 = vld [vmem:[%s3227_s21 + $0xf8] sm:$0xff]  ;;  %v1818_v30 = vld [vmem:[%s3227_s21 + $0xe0] sm:$0xff]  ;;  %v1820_v50 = vld [vmem:[%s3227_s21 + $0xf0] sm:$0xff] }
 0x65a   : > { %1860 = vmatprep.subr.mxu0 %v1839_v24  ;;  %1965 = vmatprep.subr.mxu1 %v1841_v8  ;;  %v1815_v35 = vld [vmem:[%s3227_s21 + $0xc8] sm:$0xff]  ;;  %v1817_v43 = vld [vmem:[%s3227_s21 + $0xd8] sm:$0xff]  ;;  %v1814_v36 = vld [vmem:[%s3227_s21 + $0xc0] sm:$0xff] }
 0x65b   : > { %v1816_v48 = vld [vmem:[%s3227_s21 + $0xd0] sm:$0xff]  ;;  %v1811_v16 = vld [vmem:[%s3227_s21 + $0xa8] sm:$0xff]  ;;  %v1813_v38 = vld [vmem:[%s3227_s21 + $0xb8] sm:$0xff] }
 0x65c   : > { %v1810_v21 = vld [vmem:[%s3227_s21 + $0xa0] sm:$0xff]  ;;  %v1812_v45 = vld [vmem:[%s3227_s21 + $0xb0] sm:$0xff]  ;;  %v1807_v24 = vld [vmem:[%s3227_s21 + $0x88] sm:$0xff] }
 0x65d   : > { %1861 = vmatpush1.xpose.msra.mxu0 %v1838_v55  ;;  %1966 = vmatpush1.xpose.msra.mxu1 %v1840_v59  ;;  %v1809_v8 = vld [vmem:[%s3227_s21 + $0x98] sm:$0xff]  ;;  %v1806_v55 = vld [vmem:[%s3227_s21 + $0x80] sm:$0xff]  ;;  %v1808_v59 = vld [vmem:[%s3227_s21 + $0x90] sm:$0xff] }
 0x65e   : > { %1862 = vmatprep.subr.mxu0 %v1835_v39  ;;  %1967 = vmatprep.subr.mxu1 %v1837_v60  ;;  %v1803_v39 = vld [vmem:[%s3227_s21 + $0x68] sm:$0xff]  ;;  %v1805_v60 = vld [vmem:[%s3227_s21 + $0x78] sm:$0xff] }
 0x661   : > { %1863 = vmatpush1.xpose.msra.mxu0 %v1834_v54  ;;  %1968 = vmatpush1.xpose.msra.mxu1 %v1836_v12  ;;  %v1802_v54 = vld [vmem:[%s3227_s21 + $0x60] sm:$0xff]  ;;  %v1804_v12 = vld [vmem:[%s3227_s21 + $0x70] sm:$0xff] }
 0x662   : > { %1864 = vmatprep.subr.mxu0 %v1831_v6  ;;  %1969 = vmatprep.subr.mxu1 %v1833_v14  ;;  %v1799_v6 = vld [vmem:[%s3227_s21 + $0x48] sm:$0xff]  ;;  %v1801_v14 = vld [vmem:[%s3227_s21 + $0x58] sm:$0xff] }
 0x665   : > { %1865 = vmatpush1.xpose.msra.mxu0 %v1830_v57  ;;  %1970 = vmatpush1.xpose.msra.mxu1 %v1832_v23  ;;  %v1798_v57 = vld [vmem:[%s3227_s21 + $0x40] sm:$0xff]  ;;  %v1800_v23 = vld [vmem:[%s3227_s21 + $0x50] sm:$0xff] }
 0x666   : > { %1866 = vmatprep.subr.mxu0 %v1827_v52  ;;  %1971 = vmatprep.subr.mxu1 %v1829_v13  ;;  %v1795_v52 = vld [vmem:[%s3227_s21 + $0x28] sm:$0xff]  ;;  %v1797_v13 = vld [vmem:[%s3227_s21 + $0x38] sm:$0xff] }
 0x669   : > { %1867 = vmatpush1.xpose.msra.mxu0 %v1826_v1  ;;  %1972 = vmatpush1.xpose.msra.mxu1 %v1828_v17  ;;  %v1794_v1 = vld [vmem:[%s3227_s21 + $0x20] sm:$0xff]  ;;  %v1796_v17 = vld [vmem:[%s3227_s21 + $0x30] sm:$0xff] }
 0x66a   : > { %1868 = vmatprep.subr.mxu0 %v1823_v41  ;;  %1973 = vmatprep.subr.mxu1 %v1825_v61  ;;  %v1791_v41 = vld [vmem:[%s3227_s21 + $0x8] sm:$0xff]  ;;  %v1793_v61 = vld [vmem:[%s3227_s21 + $0x18] sm:$0xff] }
 0x66d   : > { %1869 = vmatpush1.xpose.msra.mxu0 %v1822_v10  ;;  %1974 = vmatpush1.xpose.msra.mxu1 %v1824_v27  ;;  %v1790_v10 = vld [vmem:[%s3227_s21] sm:$0xff]  ;;  %v1792_v27 = vld [vmem:[%s3227_s21 + $0x10] sm:$0xff] }
 0x66e   : > { %1870 = vmatprep.subr.mxu0 %v1819_v34  ;;  %1975 = vmatprep.subr.mxu1 %v1821_v28  ;;  %v5242_v34 = vmax.f32 %v3343_v31, 0.0  ;;  %v5243_v28 = vmax.f32 %v3346_v32, 0.0  ;;  %v5246_v31 = vmax.f32 %v3358_v42, 0.0  ;;  %v5247_v32 = vmax.f32 %v3362_v44, 0.0 }
 0x66f   : > { %v5250_v42 = vmax.f32 %v3377_v56, 0.0  ;;  %v5251_v44 = vmax.f32 %v3381_v58, 0.0  ;;  %v5257_v56 = vmax.f32 %v3397_v7, 0.0  ;;  %v5265_v7 = vmax.f32 %v3417_v29, 0.0 }
 0x671   : > { %1871 = vmatpush1.xpose.msra.mxu0 %v1818_v30  ;;  %1976 = vmatpush1.xpose.msra.mxu1 %v1820_v50  ;;  %v5244_v30 = vmax.f32 %v3368_v49, 0.0  ;;  %v5245_v50 = vmax.f32 %v3372_v51, 0.0  ;;  %v5248_v49 = vmax.f32 %v3388_v0, 0.0  ;;  %v5249_v51 = vmax.f32 %v3392_v2, 0.0 }
 0x672   : > { %1872 = vmatprep.subr.mxu0 %v1815_v35  ;;  %1977 = vmatprep.subr.mxu1 %v1817_v43  ;;  %v5253_v0 = vmax.f32 %v3408_v15, 0.0  ;;  %v5255_v2 = vmax.f32 %v3412_v19, 0.0  ;;  %v5261_v15 = vmax.f32 %v3428_v47, 0.0 }
 0x675   : > { %1873 = vmatpush1.xpose.msra.mxu0 %v1814_v36  ;;  %1978 = vmatpush1.xpose.msra.mxu1 %v1816_v48  ;;  %v5290_v36 = vld [vmem:[#allocation41_spill] sm:$0xff] }
 0x676   : > { %1874 = vmatprep.subr.mxu0 %v1811_v16  ;;  %1979 = vmatprep.subr.mxu1 %v1813_v38  ;;  %v5291_v48 = vmax.f32 %v5290_v36, 0.0  ;;  %v5292_v16 = vld [vmem:[#allocation42_spill] sm:$0xff] }
 0x677   : > { %v5293_v38 = vmax.f32 %v5292_v16, 0.0 }
 0x679   : > { %1875 = vmatpush1.xpose.msra.mxu0 %v1810_v21  ;;  %1980 = vmatpush1.xpose.msra.mxu1 %v1812_v45  ;;  %v5294_v21 = vld [vmem:[#allocation39_spill] sm:$0xff] }
 0x67a   : > { %1876 = vmatprep.subr.mxu0 %v1807_v24  ;;  %1981 = vmatprep.subr.mxu1 %v1809_v8  ;;  %v5295_v45 = vmax.f32 %v5294_v21, 0.0  ;;  %v2916_v8 = vmov 1966171168  }
 0x67d   : > { %1877 = vmatpush1.xpose.msra.mxu0 %v1806_v55  ;;  %1982 = vmatpush1.xpose.msra.mxu1 %v1808_v59  ;;  %v1762_v55 = vunpack.c.l.s4 %v2916_v8 }
 0x67e   : > { %1878 = vmatprep.subr.mxu0 %v1803_v39  ;;  %1983 = vmatprep.subr.mxu1 %v1805_v60  ;;  %v1759_v39 = vcombine.low %v4734_v5, %v4736_v25  ;;  %v1760_v60 = vcombine.low %v4738_v63, %v4740_v26 }
 0x67f   : > { %v1763_v59 = vunpack.c.0.s8 %v1762_v55 }
 0x681   : > { %1879 = vmatpush1.xpose.msra.mxu0 %v1802_v54  ;;  %1984 = vmatpush1.xpose.msra.mxu1 %v1804_v12  ;;  %v5299_v54 = vld [vmem:[#allocation32_spill] sm:$0xff] }
 0x682   : > { %1880 = vmatprep.subr.mxu0 %v1799_v6  ;;  %1985 = vmatprep.subr.mxu1 %v1801_v14  ;;  %v1766_v12 = vsub.s32 %v1763_v59, %v5299_v54 }
 0x684   : > { %v1767_v6 = vrot.slane %v1759_v39, %v1766_v12  ;;  %v1774_v14 = vrot.slane %v1760_v60, %v1766_v12 }
 0x685   : > { %1881 = vmatpush1.xpose.msra.mxu0 %v1798_v57  ;;  %1986 = vmatpush1.xpose.msra.mxu1 %v1800_v23  ;;  %v1754_v23 = vld [vmem:[%s4748_s6] sm:$0xf] }
 0x686   : > { %1882 = vmatprep.subr.mxu0 %v1795_v52  ;;  %1987 = vmatprep.subr.mxu1 %v1797_v13  ;;  %v1775_v57 = vcombine.low %v1767_v6, %v1774_v14  ;;  %v5301_v13 = vlaneseq }
 0x689   : > { %1883 = vmatpush1.xpose.msra.mxu0 %v1794_v1  ;;  %1988 = vmatpush1.xpose.msra.mxu1 %v1796_v17 }
 0x68a   : > { %1884 = vmatprep.subr.mxu0 %v1791_v41  ;;  %1989 = vmatprep.subr.mxu1 %v1793_v61 }
 0x68d   : > { %1885 = vmatpush1.xpose.msra.mxu0 %v1790_v10  ;;  %1990 = vmatpush1.xpose.msra.mxu1 %v1792_v27 }
 0x690   : > { %2363 = vmatmul.mubr.msk.f32.vlgmr.msra.gmra.mxu0 %vm1533_vm0, %v5242_v34  ;;  %2379 = vmatmul.mubr.msk.f32.vlgmr.msra.gmra.mxu1 %vm1535_vm2, %v5243_v28  ;;  %vm5252_vm0 = vcmp.ge.f32.partialorder %v3381_v58, %v4578_v11  ;;  %vm5256_vm2 = vcmp.ge.f32.partialorder %v3412_v19, %v4604_v4  ;;  %v5259_v58 = vmax.f32 %v3401_v9, 0.0  ;;  %v5263_v19 = vmax.f32 %v3432_v53, 0.0 }
 0x691   : > { %2364 = vmatprep.mubr.msk.f32.mxu0 %vm1538_vm5, %v5244_v30  ;;  %2380 = vmatprep.mubr.msk.f32.mxu1 %vm1540_vm7, %v5245_v50  ;;  %vm5262_vm5 = vcmp.ge.f32.partialorder %v3428_v47, %v4630_v40  ;;  %vm5266_vm7 = vcmp.ge.f32.partialorder %v3417_v29, %v4630_v40  ;;  %v5269_v47 = vmax.f32 %v3448_v20, 0.0  ;;  %v5274_v29 = vmax.f32 %v3437_v62, 0.0  ;;  %v5284_v62 = vld [vmem:[#allocation35_spill] sm:$0xff] }
 0x692   : > { %v5285_v35 = vmax.f32 %v5284_v62, 0.0 }
 0x694   : > { %2365 = vmatmul.mubr.msk.f32.gmra.mxu0 %vm1537_vm4, %v5246_v31  ;;  %2381 = vmatmul.mubr.msk.f32.gmra.mxu1 %vm1539_vm6, %v5247_v32  ;;  %vm5260_vm4 = vcmp.ge.f32.partialorder %v3401_v9, %v4604_v4  ;;  %vm5264_vm6 = vcmp.ge.f32.partialorder %v3432_v53, %v4630_v40  ;;  %v5267_v9 = vmax.f32 %v3421_v33, 0.0  ;;  %v5271_v53 = vld [vmem:[#allocation34_spill] sm:$0xff] }
 0x695   : > { %2366 = vmatprep.mubr.msk.f32.mxu0 %vm1542_vm9, %v5248_v49  ;;  %2382 = vmatprep.mubr.msk.f32.mxu1 %vm1544_vm11, %v5249_v51  ;;  %vm5270_vm9 = vcmp.ge.f32.partialorder %v3448_v20, %v4656_v37  ;;  %v5272_v46 = vmax.f32 %v5271_v53, 0.0  ;;  %vm5273_vm11 = vcmp.ge.f32.partialorder %v5271_v53, %v4656_v37  ;;  %v5279_v20 = vld [vmem:[#allocation37_spill] sm:$0xff]  ;;  %v5282_v4 = vld [vmem:[#allocation38_spill] sm:$0xff] }
 0x696   : > { %v5280_v11 = vmax.f32 %v5279_v20, 0.0 }
 0x698   : > { %2367 = vmatmul.mubr.msk.f32.gmra.mxu0 %vm1541_vm8, %v5250_v42  ;;  %2383 = vmatmul.mubr.msk.f32.gmra.mxu1 %vm5252_vm0, %v5251_v44  ;;  %vm5268_vm8 = vcmp.ge.f32.partialorder %v3421_v33, %v4630_v40  ;;  %v5276_v33 = vld [vmem:[#allocation33_spill] sm:$0xff]  ;;  %v5283_v40 = vmax.f32 %v5282_v4, 0.0 }
 0x699   : > { %2368 = vmatprep.mubr.msk.f32.mxu0 %vm5254_vm1, %v5253_v0  ;;  %2384 = vmatprep.mubr.msk.f32.mxu1 %vm5256_vm2, %v5255_v2  ;;  %v5277_v3 = vmax.f32 %v5276_v33, 0.0  ;;  %vm5278_vm0 = vcmp.ge.f32.partialorder %v5276_v33, %v4656_v37  ;;  %vm5281_vm1 = vcmp.ge.f32.partialorder %v5279_v20, %v4682_v22  ;;  %vm5286_vm2 = vcmp.ge.f32.partialorder %v5284_v62, %v4682_v22  ;;  %v5287_v37 = vld [vmem:[#allocation36_spill] sm:$0xff] }
 0x69a   : > { %v5288_v43 = vmax.f32 %v5287_v37, 0.0 }
 0x69c   : > { %2369 = vmatmul.mubr.msk.f32.gmra.mxu0 %vm5258_vm3, %v5257_v56  ;;  %2385 = vmatmul.mubr.msk.f32.gmra.mxu1 %vm5260_vm4, %v5259_v58  ;;  %vm5289_vm3 = vcmp.ge.f32.partialorder %v5287_v37, %v4682_v22  ;;  %v5296_v22 = vld [vmem:[#allocation40_spill] sm:$0xff] }
 0x69d   : > { %2370 = vmatprep.mubr.msk.f32.mxu0 %vm5262_vm5, %v5261_v15  ;;  %2386 = vmatprep.mubr.msk.f32.mxu1 %vm5264_vm6, %v5263_v19  ;;  %v5297_v24 = vmax.f32 %v5296_v22, 0.0 }
 0x6a0   : > { %2371 = vmatmul.mubr.msk.f32.gmra.mxu0 %vm5266_vm7, %v5265_v7  ;;  %2387 = vmatmul.mubr.msk.f32.gmra.mxu1 %vm5268_vm8, %v5267_v9 }
 0x6a1   : > { %2372 = vmatprep.mubr.msk.f32.mxu0 %vm5270_vm9, %v5269_v47  ;;  %2388 = vmatprep.mubr.msk.f32.mxu1 %vm5273_vm11, %v5272_v46 }
 0x6a4   : > { %2373 = vmatmul.mubr.msk.f32.gmra.mxu0 %vm5275_vm14, %v5274_v29  ;;  %2389 = vmatmul.mubr.msk.f32.gmra.mxu1 %vm5278_vm0, %v5277_v3 }
 0x6a5   : > { %2374 = vmatprep.mubr.msk.f32.mxu0 %vm5281_vm1, %v5280_v11  ;;  %2390 = vmatprep.mubr.msk.f32.mxu1 %vm1560_vm10, %v5283_v40  ;;  %vm5298_vm10 = vcmp.ge.f32.partialorder %v5296_v22, %v4708_v18  ;;  %v1782_v18 = vrot.slane %v1775_v57, %v1766_v12 }
 0x6a7   : > { %v1784_v52 = vadd.f32 %v1782_v18, %v1754_v23 }
 0x6a8   : > { %2375 = vmatmul.mubr.msk.f32.gmra.mxu0 %vm5286_vm2, %v5285_v35  ;;  %2391 = vmatmul.mubr.msk.f32.gmra.mxu1 %vm5289_vm3, %v5288_v43 }
 0x6a9   : > { %2376 = vmatprep.mubr.msk.f32.mxu0 %vm1562_vm13, %v5291_v48  ;;  %2392 = vmatprep.mubr.msk.f32.mxu1 %vm1564_vm15, %v5293_v38 }
 0x6ac   : > { %2377 = vmatmul.mubr.msk.f32.gmra.mxu0 %vm1561_vm12, %v5295_v45  ;;  %2393 = vmatmul.mubr.msk.f32.gmra.mxu1 %vm5298_vm10, %v5297_v24  ;;  %vm1787_vm12 = vcmp.lt.s32.totalorder %v5301_v13, 512 }
 0x6ad   : > { %1789 = vst.msk [vmem:[%s4748_s6] sm:$0xf] %vm1787_vm12, %v1784_v52 }
 0x6ae   : > { %2759 = shalt.err (!%p2756_p10)
}
 0x6af   : > { %s2760_s21 = scalar_lea.hbm %s2108_s26, 64  ;;  %s2764_s16 = scalar_lea.hbm %s5302_s18, 256 }
 0x6b0   : > { %p2761_p11 = scmp.ne.s32.totalorder %s2108_s26, %s2760_s21  ;;  %p2765_p3 = scmp.lt.s32.totalorder %s2108_s26, %s5302_s18 }
 0x6b1   : > { %p2766_p0 = scmp.lt.s32.totalorder %s2764_s16, %s2760_s21 }
 0x6b2   : > { %p2762_p7 = pnand %p2761_p11, %p3139_p2 }
 0x6b3   : > { %p2767_p6 = por %p2766_p0, %p2765_p3 }
 0x6b4   : > { %p2763_p5 = pneg %p2762_p7 }
 0x6b6   : > { %p2768_p8 = pnand %p2767_p6, %p2763_p5 }
 0x6b8   : > { %2771 = shalt.err (!%p2768_p8)
}
 0x6b9   : > { %2512 = dma.vmem_to_hbm [thread:$0]  (%p3139_p2), %s2111_s23, 64, %s2108_s26, %s2078_s27   ;;  %v5303_v63 = vld [vmem:[#allocation31_spill] sm:$0xff] }
 0x6ba   : > { %s5304_s17 = sld [smem:[#allocation22_spill]]  ;;  %s2397_s0 = sshll.u32 %s2892_s28, 4 }
 0x6bb   : > { %s5305_s14 = sld [smem:[#allocation25_spill]]  ;;  %s2093_s24 = sshll.u32 %s4744_s4, 4  ;;  %s5026_s24 = int_to_ptr.vmem [resolvable:$true] %s2093_s24 }
 0x6bc   : > { %s5306_s26 = sld [smem:[#allocation46_spill]]  ;;  %s2073_s9 = scalar_lea.sflag [#allocation4], %s3198_s10 }
 0x6bd   : > { %s2772_s1 = scalar_lea.vmem %s5026_s24, 1024  ;;  %s2918_s13 = smov [#allocation10]  }
 0x6be   : > { %p2773_p2 = scmp.ne.s32.totalorder %s5026_s24, %s2772_s1  ;;  %s2776_s21 = sshll.u32 %s2918_s13, 4  ;;  %s2777_s21 = int_to_ptr.vmem [resolvable:$false] %s2776_s21 }
 0x6bf   : > { %s2778_s20 = scalar_lea.vmem %s2777_s21, 2048  ;;  %p2779_p9 = scmp.lt.s32.totalorder %s5026_s24, %s2777_s21 }
 0x6c0   : > { %s2396_s6 = sshll.u32 %s5304_s17, 3  ;;  %p2780_p10 = scmp.lt.s32.totalorder %s2778_s20, %s2772_s1 }
 0x6c1   : > { %s2090_s19 = sadd.s32 %s2397_s0, %s2396_s6  ;;  %p5308_p1 = scmp.ne.s32.totalorder %s5305_s14, 0 }
 0x6c2   : > { %s2398_s23 = sshll.u32 %s2090_s19, 7  ;;  %s5307_s12 = smov %s5306_s26 }
 0x6c3   : > { %s5024_s27 = scalar_lea.hbm %s5306_s26, %s2398_s23  ;;  %p2774_p4 = pnand %p2773_p2, %p5308_p1 }
 0x6c4   : > { %p2781_p11 = por %p2780_p10, %p2779_p9 }
 0x6c5   : > { %p2775_p13 = pneg %p2774_p4 }
 0x6c7   : > { %p2782_p7 = pnand %p2781_p11, %p2775_p13 }
 0x750   : > { %v1920_v5 = vpop.f32.mrf.mxu0  ;;  %v2025_v25 = vpop.f32.mrf.mxu1 }
 0x751   : > { %v1921_v26 = vadd.f32 %v5303_v63, %v1920_v5 }
 0x752   : > { %v1922_v1 = vpop.f32.mrf.mxu0  ;;  %v2027_v17 = vpop.f32.mrf.mxu1 }
 0x753   : > { %v2026_v41 = vadd.f32 %v2025_v25, %v1921_v26 }
 0x754   : > { %v1925_v61 = vpop.f32.mrf.mxu0  ;;  %v2030_v10 = vpop.f32.mrf.mxu1 }
 0x755   : > { %2064 = vst [vmem:[%s4744_s4] sm:$0xff] %v2026_v41  ;;  %v1926_v27 = vadd.f32 %v5303_v63, %v1925_v61 }
 0x756   : > { %v1927_v34 = vpop.f32.mrf.mxu0  ;;  %v2032_v28 = vpop.f32.mrf.mxu1 }
 0x757   : > { %v2031_v30 = vadd.f32 %v2030_v10, %v1926_v27 }
 0x758   : > { %v1930_v50 = vpop.f32.mrf.mxu0  ;;  %v2035_v31 = vpop.f32.mrf.mxu1 }
 0x759   : > { %2065 = vst [vmem:[%s4744_s4 + $0x8] sm:$0xff] %v2031_v30  ;;  %v1931_v32 = vadd.f32 %v5303_v63, %v1930_v50 }
 0x75a   : > { %v1932_v49 = vpop.f32.mrf.mxu0  ;;  %v2037_v51 = vpop.f32.mrf.mxu1 }
 0x75b   : > { %v2036_v42 = vadd.f32 %v2035_v31, %v1931_v32 }
 0x75c   : > { %v1935_v44 = vpop.f32.mrf.mxu0  ;;  %v2040_v0 = vpop.f32.mrf.mxu1 }
 0x75d   : > { %2066 = vst [vmem:[%s4744_s4 + $0x10] sm:$0xff] %v2036_v42  ;;  %v1936_v2 = vadd.f32 %v5303_v63, %v1935_v44 }
 0x75e   : > { %v1937_v56 = vpop.f32.mrf.mxu0  ;;  %v2042_v58 = vpop.f32.mrf.mxu1 }
 0x75f   : > { %v2041_v15 = vadd.f32 %v2040_v0, %v1936_v2 }
 0x760   : > { %v1940_v19 = vpop.f32.mrf.mxu0  ;;  %v2045_v7 = vpop.f32.mrf.mxu1 }
 0x761   : > { %2067 = vst [vmem:[%s4744_s4 + $0x18] sm:$0xff] %v2041_v15  ;;  %v1941_v9 = vadd.f32 %v5303_v63, %v1940_v19 }
 0x762   : > { %v1942_v47 = vpop.f32.mrf.mxu0  ;;  %v2047_v53 = vpop.f32.mrf.mxu1 }
 0x763   : > { %v2046_v46 = vadd.f32 %v2045_v7, %v1941_v9 }
 0x764   : > { %v1945_v29 = vpop.f32.mrf.mxu0  ;;  %v2050_v33 = vpop.f32.mrf.mxu1 }
 0x765   : > { %2068 = vst [vmem:[%s4744_s4 + $0x20] sm:$0xff] %v2046_v46  ;;  %v1946_v3 = vadd.f32 %v5303_v63, %v1945_v29 }
 0x766   : > { %v1947_v20 = vpop.f32.mrf.mxu0  ;;  %v2052_v11 = vpop.f32.mrf.mxu1 }
 0x767   : > { %v2051_v4 = vadd.f32 %v2050_v33, %v1946_v3 }
 0x768   : > { %v1950_v40 = vpop.f32.mrf.mxu0  ;;  %v2055_v62 = vpop.f32.mrf.mxu1 }
 0x769   : > { %2069 = vst [vmem:[%s4744_s4 + $0x28] sm:$0xff] %v2051_v4  ;;  %v1951_v35 = vadd.f32 %v5303_v63, %v1950_v40 }
 0x76a   : > { %v1952_v37 = vpop.f32.mrf.mxu0  ;;  %v2057_v43 = vpop.f32.mrf.mxu1 }
 0x76b   : > { %v2056_v36 = vadd.f32 %v2055_v62, %v1951_v35 }
 0x76c   : > { %v1955_v48 = vpop.f32.mrf.mxu0  ;;  %v2060_v16 = vpop.f32.mrf.mxu1 }
 0x76d   : > { %2070 = vst [vmem:[%s4744_s4 + $0x30] sm:$0xff] %v2056_v36  ;;  %v1956_v38 = vadd.f32 %v5303_v63, %v1955_v48 }
 0x76e   : > { %v1957_v21 = vpop.f32.mrf.mxu0  ;;  %v2062_v45 = vpop.f32.mrf.mxu1 }
 0x76f   : > { %v2061_v22 = vadd.f32 %v2060_v16, %v1956_v38 }
 0x771   : > { %2071 = vst [vmem:[%s4744_s4 + $0x38] sm:$0xff] %v2061_v22 }
 0x772   : > { %2785 = shalt.err (!%p2782_p7)
}
 0x773   : > { %s2786_s4 = scalar_lea.hbm %s5024_s27, 1024  ;;  %s2790_s15 = scalar_lea.hbm %s5307_s12, 8192 }
 0x774   : > { %p2787_p5 = scmp.ne.s32.totalorder %s5024_s27, %s2786_s4  ;;  %p2791_p6 = scmp.lt.s32.totalorder %s5024_s27, %s5307_s12 }
 0x775   : > { %p2792_p8 = scmp.lt.s32.totalorder %s2790_s15, %s2786_s4 }
 0x776   : > { %p2788_p3 = pnand %p2787_p5, %p5308_p1 }
 0x777   : > { %p2793_p2 = por %p2792_p8, %p2791_p6 }
 0x778   : > { %p2789_p0 = pneg %p2788_p3 }
 0x77a   : > { %p2794_p4 = pnand %p2793_p2, %p2789_p0 }
 0x77c   : > { %2797 = shalt.err (!%p2794_p4)
}
 0x77d   : > { %s2919_s6 = smov 128   ;;  %s2920_s0 = smov 8  }
 0x77e   : > { %2511 = dma.vmem_to_hbm [thread:$0]  (%p5308_p1), %s5026_s24, 1024, %s5024_s27, %s2073_s9, %s2919_s6, %s2919_s6, %s2920_s0  }
 0x77f PF: > { %s5309_s19 = sld [smem:[#allocation20_spill]]  ;;  %p2536_p13 = scmp.ge.s32.totalorder %s2904_s7, 2 }
 0x781   : > { %p2529_p9 = pnand %p2536_p13, %p3130_p12 }
 0x783   : > { %p2530_p10 = pneg %p2529_p9 }
 0x785   : > { %s2122_s28 = sand.u32 1, %s5309_s19  }
 0x786   : > { %s2123_s11 = scalar_lea.sflag [#allocation4], %s2122_s28 }
 0x787   : > { %2855 = dma.done.wait (%p2530_p10), %s2123_s11, 1024  }
 0x788   : > { %2857 = vsyncadd (%p2530_p10), %s2123_s11, 4294966272  ;;  %s5311_s26 = sld [smem:[#allocation18_spill]] }
 0x789   : > { %s5312_s1 = sld [smem:[#allocation30_spill]] }
 0x78e   : > { %s2131_s13 = sand.u32 1, %s5311_s26  }
 0x78f   : > { %p5313_p11 = scmp.ne.s32.totalorder %s5312_s1, 0  ;;  %s2132_s10 = scalar_lea.sflag [#allocation12], %s2131_s13 }
 0x791   : > { %p2532_p7 = pnand %p2536_p13, %p5313_p11 }
 0x793   : > { %p2533_p5 = pneg %p2532_p7 }
 0x795   : > { %2859 = dma.done.wait (%p2533_p5), %s2132_s10, 64  }
 0x796   : > { %2861 = vsyncadd (%p2533_p5), %s2132_s10, 4294967232  ;;  %s32_s7 = sadd.s32 1, %s2904_s7   ;;  %s5314_s14 = sld [smem:[#allocation19_spill]] }
 0x797   : > { %p29_p1 = scmp.ge.s32.totalorder %s32_s7, 10   ;;  %s5315_s23 = sld [smem:[#allocation26_spill]] }
 0x798   : > { %s5316_s27 = sld [smem:[#allocation21_spill]]  ;;  %s5320_s21 = smov %s2868_s22 }
 0x799   : > { %s5317_s26 = sld [smem:[#allocation27_spill]]  ;;  %s5322_s24 = smov %s2880_s25 }
 0x79a   : > { %s5318_s9 = sld [smem:[#allocation23_spill]]  ;;  %s5325_s28 = smov %s2900_s30 }
 0x79b   : > { %s5319_s20 = sld [smem:[#allocation24_spill]] }
 0x79c   : > { %s5321_s22 = smov %s5314_s14 }
 0x79d   :  { %31 = sbr.rel (!%p29_p1) target bundleno = 21 (0x15), region = 146 }
 0x79e   : > { %s5323_s25 = smov %s5316_s27  ;;  %s5324_s27 = smov %s2896_s29 }
 0x7a0   : > { %s5326_s29 = smov %s5318_s9 }
 0x7a1   : > { %s5327_s30 = smov %s5319_s20 }
 0x7a2   :  { %2137 = vsyncpa [#allocation3], 1 }
 0x7a3   :  { %2139 = vsyncpa [#allocation3 + $0x1], 1 }
 0x7a4   :  { %2140 = vsyncpa [#allocation6], 1 }
 0x7a5   :  { %2142 = vsyncpa [#allocation6 + $0x1], 1 }
 0x7a6   :  { %2143 = vsyncpa [#allocation9], 1 }
 0x7a7   :  { %2145 = vsyncpa [#allocation9 + $0x1], 1 }
 0x7a8   :  { %2146 = vsyncpa [#allocation4], 1 }
 0x7a9   :  { %2148 = vsyncpa [#allocation4 + $0x1], 1 }
 0x7aa   :  { %2149 = vsyncpa [#allocation12], 1 }
 0x7ab   :  { %2151 = vsyncpa [#allocation12 + $0x1], 1 }

</bundles_post_ra>
